<compile_context>
chip_gen: v5e
topology: v5e:2x2
jax: 0.10.0
libtpu: 0.0.40
codegen_flags: <defaults>
</compile_context>

<pallas_src>
import jax
import jax.numpy as jnp
from jax import lax
from jax.experimental import pallas as pl
from jax.experimental.pallas import tpu as pltpu


def _align8(n):
    return ((n + 7) // 8) * 8


# ----------------------------------------------------------------------------
# Parameter preparation (done once): fold BN running stats into the conv
# weight/bias, pre-transpose LSTM / FC weights, combine the two LSTM biases,
# and pack EVERYTHING into one lane-aligned f32 slab (single DMA).
# All inputs are in PyTorch layout.  Returns (slab, meta).
# ----------------------------------------------------------------------------
def prepare_params(conv_w, conv_b, bn_gamma, bn_beta, bn_mean, bn_var, bn_eps,
                   w_ih, w_hh, b_ih, b_hh, fc_w, fc_b):
    F, C, K = conv_w.shape
    H = w_hh.shape[1]
    n_steps = fc_w.shape[0]
    H4 = 4 * H

    scale = bn_gamma / jnp.sqrt(bn_var + bn_eps)                     # (F,)
    # row k*C + c of wc  <->  lane k*C + c of the in-kernel im2col rows
    wc = jnp.transpose(conv_w, (2, 1, 0)).reshape(K * C, F) * scale[None, :]
    bc = (conv_b - bn_mean) * scale + bn_beta                        # (F,)
    wih = w_ih.T                                                     # (F, 4H)
    whh = w_hh.T                                                     # (H, 4H)
    bl = b_ih + b_hh                                                 # (4H,)
    wfc = fc_w.T                                                     # (H, n_steps)

    lanes = max(H4, K * C, F, n_steps, 128)
    off_wc = 0
    off_bc = off_wc + _align8(K * C)
    off_wih = off_bc + 8
    off_whh = off_wih + _align8(F)
    off_bl = off_whh + _align8(H)
    off_wfc = off_bl + 8
    off_bfc = off_wfc + _align8(H)
    rows = off_bfc + 8

    slab = jnp.zeros((rows, lanes), jnp.float32)
    slab = slab.at[off_wc:off_wc + K * C, :F].set(wc)
    slab = slab.at[off_bc, :F].set(bc)
    slab = slab.at[off_wih:off_wih + F, :H4].set(wih)
    slab = slab.at[off_whh:off_whh + H, :H4].set(whh)
    slab = slab.at[off_bl, :H4].set(bl)
    slab = slab.at[off_wfc:off_wfc + H, :n_steps].set(wfc)
    slab = slab.at[off_bfc, :n_steps].set(fc_b)

    meta = dict(K=K, C=C, F=F, H=H, n_steps=n_steps,
                off_wc=off_wc, off_bc=off_bc, off_wih=off_wih, off_whh=off_whh,
                off_bl=off_bl, off_wfc=off_wfc, off_bfc=off_bfc)
    return slab, meta


# ----------------------------------------------------------------------------
# Fused kernel factory: Conv1d(k,pad=1)+BN+ReLU+MaxPool(2) -> LSTM -> Linear,
# single program, everything resident in VMEM (total footprint ~100 KB).
# ----------------------------------------------------------------------------
def make_forward(meta):
    K = meta["K"]
    F = meta["F"]
    H = meta["H"]
    n_steps = meta["n_steps"]
    H4 = 4 * H
    HI = lax.Precision.HIGHEST
    off_wc, off_bc = meta["off_wc"], meta["off_bc"]
    off_wih, off_whh = meta["off_wih"], meta["off_whh"]
    off_bl, off_wfc, off_bfc = meta["off_bl"], meta["off_wfc"], meta["off_bfc"]

    def kernel(x_ref, w_ref, out_ref):
        B, L, C = x_ref.shape
        T = L // 2                                   # MaxPool1d(2) output length

        # --- one-time reads from the packed weight slab ----------------------
        wc = w_ref[off_wc:off_wc + K * C, 0:F]       # (K*C, F) conv (BN folded)
        bc = w_ref[off_bc:off_bc + 1, 0:F]           # (1, F)   conv bias + BN shift
        wih = w_ref[off_wih:off_wih + F, 0:H4]       # (F, 4H)  LSTM W_ih^T
        whh = w_ref[off_whh:off_whh + H, 0:H4]       # (H, 4H)  LSTM W_hh^T
        bl = w_ref[off_bl:off_bl + 1, 0:H4]          # (1, 4H)  b_ih + b_hh
        wfc = w_ref[off_wfc:off_wfc + H, 0:n_steps]  # (H, n_steps)
        bfc = w_ref[off_bfc:off_bfc + 1, 0:n_steps]  # (1, n_steps)

        # --- CNN: Conv1d(k=3, pad=1) as ONE matmul over in-kernel im2col -----
        zrow = jnp.zeros((1, C), jnp.float32)
        taps_b = []
        for b in range(B):
            xb = x_ref[b]                                           # (L, C)
            tm1 = jnp.concatenate([zrow, xb[0:L - 1, :]], axis=0)   # x[t-1] (left pad)
            tp1 = jnp.concatenate([xb[1:L, :], zrow], axis=0)       # x[t+1] (right pad)
            taps_b.append(jnp.concatenate([tm1, xb, tp1], axis=1))  # (L, K*C)
        taps = jnp.concatenate(taps_b, axis=0)                      # (B*L, K*C)
        y = jnp.dot(taps, wc, preferred_element_type=jnp.float32, precision=HI)
        y = jnp.maximum(y + bc, 0.0)                 # conv bias + BN + ReLU
        # MaxPool1d(2): max over adjacent time rows (static slices, no stride).
        pooled = []
        for b in range(B):
            for t in range(T):
                r = b * L + 2 * t
                pooled.append(jnp.maximum(y[r:r + 1, :], y[r + 1:r + 2, :]))
        feat = jnp.concatenate(pooled, axis=0)       # (B*T, F), rows (b, t)
        # TODO(synk): Dropout layers are identity in eval()/inference mode.

        # --- LSTM: input projection hoisted out of the recurrence ------------
        gx = jnp.dot(feat, wih, preferred_element_type=jnp.float32,
                     precision=HI) + bl              # (B*T, 4H)
        # Per-step (B, 4H) slabs; static slices, independent of h, so they sit
        # off the serial critical path.
        gxs = [jnp.concatenate(
                   [gx[b * T + t:b * T + t + 1, :] for b in range(B)], axis=0)
               for t in range(T)]

        h = jnp.zeros((B, H), jnp.float32)
        c = jnp.zeros((B, H), jnp.float32)
        # TODO(synk): W_hh could be held resident in MXU weight registers via
        # pltpu.matmul_push_rhs/acc/pop (and accumulated in-place in the MRB on
        # v7x); kept as jnp.dot for lowering robustness at these tiny shapes.
        for t in range(T):
            if t == 0:
                gates = gxs[0]                       # h0 == 0 -> skip the matmul
            else:
                gates = gxs[t] + jnp.dot(
                    h, whh, preferred_element_type=jnp.float32, precision=HI)
            # Full-width activations: 2 EUP passes per step instead of 4.
            sg = 0.5 * jnp.tanh(0.5 * gates) + 0.5   # sigmoid of every gate lane
            th = jnp.tanh(gates)                     # tanh of every gate lane
            i = sg[:, 0:H]
            f = sg[:, H:2 * H]
            g = th[:, 2 * H:3 * H]
            o = sg[:, 3 * H:4 * H]
            c = f * c + i * g
            h = o * jnp.tanh(c)

        # --- fc(hn[-1]) -------------------------------------------------------
        out_ref[...] = jnp.dot(h, wfc, preferred_element_type=jnp.float32,
                               precision=HI) + bfc

    @jax.jit
    def forward(x, w_slab):
        """x: (B, L, C) channels-last model input; returns (B, n_steps)."""
        B = x.shape[0]
        vmem = pltpu.MemorySpace.VMEM
        return pl.pallas_call(
            kernel,
            out_shape=jax.ShapeDtypeStruct((B, n_steps), jnp.float32),
            in_specs=[pl.BlockSpec(memory_space=vmem),
                      pl.BlockSpec(memory_space=vmem)],
            out_specs=pl.BlockSpec(memory_space=vmem),
        )(x, w_slab)

    return forward


# ----------------------------------------------------------------------------
# Pure-JAX reference (mirrors the PyTorch forward in eval mode, torch layouts)
# ----------------------------------------------------------------------------
def reference_forward(x, conv_w, conv_b, bn_gamma, bn_beta, bn_mean, bn_var,
                      bn_eps, w_ih, w_hh, b_ih, b_hh, fc_w, fc_b):
    HI = lax.Precision.HIGHEST
    B, L, C = x.shape
    F, _, K = conv_w.shape
    xc = jnp.transpose(x, (0, 2, 1))                       # (B, C, L)
    xp = jnp.pad(xc, ((0, 0), (0, 0), (1, 1)))
    y = jnp.zeros((B, F, L), jnp.float32)
    for k in range(K):                                     # Conv1d(pad=1)
        y = y + jnp.einsum("bcl,fc->bfl", xp[:, :, k:k + L], conv_w[:, :, k],
                           precision=HI)
    y = y + conv_b[None, :, None]
    y = (y - bn_mean[None, :, None]) / jnp.sqrt(bn_var[None, :, None] + bn_eps)
    y = y * bn_gamma[None, :, None] + bn_beta[None, :, None]   # BatchNorm1d eval
    y = jnp.maximum(y, 0.0)                                    # ReLU
    T = L // 2
    y = y.reshape(B, F, T, 2).max(axis=-1)                     # MaxPool1d(2)
    seq = jnp.transpose(y, (0, 2, 1))                          # (B, T, F)
    H = w_hh.shape[1]
    h = jnp.zeros((B, H), jnp.float32)
    c = jnp.zeros((B, H), jnp.float32)
    for t in range(T):                                         # nn.LSTM, 1 layer
        gates = (jnp.dot(seq[:, t, :], w_ih.T, precision=HI)
                 + jnp.dot(h, w_hh.T, precision=HI) + b_ih + b_hh)
        i = jax.nn.sigmoid(gates[:, 0:H])
        f = jax.nn.sigmoid(gates[:, H:2 * H])
        g = jnp.tanh(gates[:, 2 * H:3 * H])
        o = jax.nn.sigmoid(gates[:, 3 * H:4 * H])
        c = f * c + i * g
        h = o * jnp.tanh(c)
    return jnp.dot(h, fc_w.T, precision=HI) + fc_b[None, :]    # fc(hn[-1])


if __name__ == "__main__":
    # Module config (small): input_shape=(16, 4) -> seq_len L=16, channels C=4,
    # cnn_layers=1, lstm_layers=1, num_filters=16, kernel_size=3, pool_size=2.
    B, L, C = 2, 16, 4
    F = 16          # num_filters
    K = 3           # kernel_size
    H = 32          # hidden_size
    N_STEPS = 8     # n_steps
    EPS = 1e-5      # BatchNorm1d eps

    key = jax.random.PRNGKey(0)
    ks = jax.random.split(key, 13)
    x = jax.random.normal(ks[0], (B, L, C), jnp.float32)

    # Parameters in PyTorch layout --------------------------------------------
    conv_w = jax.random.normal(ks[1], (F, C, K), jnp.float32) * 0.2    # Conv1d.weight
    conv_b = jax.random.normal(ks[2], (F,), jnp.float32) * 0.1         # Conv1d.bias
    bn_gamma = 1.0 + 0.1 * jax.random.normal(ks[3], (F,), jnp.float32)
    bn_beta = 0.1 * jax.random.normal(ks[4], (F,), jnp.float32)
    bn_mean = 0.05 * jax.random.normal(ks[5], (F,), jnp.float32)       # running_mean
    bn_var = 1.0 + 0.1 * jax.random.uniform(ks[6], (F,), jnp.float32)  # running_var
    w_ih = jax.random.normal(ks[7], (4 * H, F), jnp.float32) * 0.1     # LSTM weight_ih_l0
    w_hh = jax.random.normal(ks[8], (4 * H, H), jnp.float32) * 0.1     # LSTM weight_hh_l0
    b_ih = jax.random.normal(ks[9], (4 * H,), jnp.float32) * 0.1
    b_hh = jax.random.normal(ks[10], (4 * H,), jnp.float32) * 0.1
    fc_w = jax.random.normal(ks[11], (N_STEPS, H), jnp.float32) * 0.1  # Linear.weight
    fc_b = jax.random.normal(ks[12], (N_STEPS,), jnp.float32) * 0.1    # Linear.bias

    w_slab, meta = prepare_params(conv_w, conv_b, bn_gamma, bn_beta, bn_mean,
                                  bn_var, EPS, w_ih, w_hh, b_ih, b_hh,
                                  fc_w, fc_b)
    forward = make_forward(meta)

    out = forward(x, w_slab)                                   # (B, N_STEPS)
    out = jax.block_until_ready(out)

    ref = reference_forward(x, conv_w, conv_b, bn_gamma, bn_beta, bn_mean,
                            bn_var, EPS, w_ih, w_hh, b_ih, b_hh, fc_w, fc_b)
    err = float(jnp.max(jnp.abs(out - ref)))
    # Kernel matmuls are pinned to Precision.HIGHEST (measured error ~1e-6);
    # tolerance keeps margin for per-generation MXU pass-count differences,
    # per the review's precision concern.
    assert err < 1e-3, f"max abs err {err}"
    print("KERNEL_OK")
</pallas_src>

<mosaic_0001>
module attributes {stable_mosaic.version = 11 : i64} {
  func.func @kernel(%arg0: memref<2x16x4xf32, #tpu.memory_space<vmem>>, %arg1: memref<120x128xf32, #tpu.memory_space<vmem>>, %arg2: memref<2x8xf32, #tpu.memory_space<vmem>>) attributes {dimension_semantics = [], scalar_prefetch = 0 : i64, scratch_operands = 0 : i64, tpu.core_type = #tpu.core_type<tc>} {
    %c0 = arith.constant 0 : index
    %c0_0 = arith.constant 0 : index
    %0 = vector.load %arg1[%c0, %c0_0] : memref<120x128xf32, #tpu.memory_space<vmem>>, vector<12x16xf32>
    %c16 = arith.constant 16 : index
    %c0_1 = arith.constant 0 : index
    %1 = vector.load %arg1[%c16, %c0_1] : memref<120x128xf32, #tpu.memory_space<vmem>>, vector<1x16xf32>
    %c24 = arith.constant 24 : index
    %c0_2 = arith.constant 0 : index
    %2 = vector.load %arg1[%c24, %c0_2] : memref<120x128xf32, #tpu.memory_space<vmem>>, vector<16x128xf32>
    %c40 = arith.constant 40 : index
    %c0_3 = arith.constant 0 : index
    %3 = vector.load %arg1[%c40, %c0_3] : memref<120x128xf32, #tpu.memory_space<vmem>>, vector<32x128xf32>
    %c72 = arith.constant 72 : index
    %c0_4 = arith.constant 0 : index
    %4 = vector.load %arg1[%c72, %c0_4] : memref<120x128xf32, #tpu.memory_space<vmem>>, vector<1x128xf32>
    %c80 = arith.constant 80 : index
    %c0_5 = arith.constant 0 : index
    %5 = vector.load %arg1[%c80, %c0_5] : memref<120x128xf32, #tpu.memory_space<vmem>>, vector<32x8xf32>
    %c112 = arith.constant 112 : index
    %c0_6 = arith.constant 0 : index
    %6 = vector.load %arg1[%c112, %c0_6] : memref<120x128xf32, #tpu.memory_space<vmem>>, vector<1x8xf32>
    %cst = arith.constant 0.000000e+00 : f32
    %7 = vector.broadcast %cst : f32 to vector<1x4xf32>
    %c0_7 = arith.constant 0 : index
    %c0_8 = arith.constant 0 : index
    %c0_9 = arith.constant 0 : index
    %8 = vector.load %arg0[%c0_7, %c0_8, %c0_9] : memref<2x16x4xf32, #tpu.memory_space<vmem>>, vector<1x16x4xf32>
    %9 = vector.shape_cast %8 : vector<1x16x4xf32> to vector<16x4xf32>
    %10 = vector.extract_strided_slice %9 {offsets = [0, 0], sizes = [15, 4], strides = [1, 1]} : vector<16x4xf32> to vector<15x4xf32>
    %11 = tpu.concatenate %7, %10 in 0 : vector<1x4xf32>, vector<15x4xf32> -> vector<16x4xf32>
    %12 = vector.extract_strided_slice %9 {offsets = [1, 0], sizes = [15, 4], strides = [1, 1]} : vector<16x4xf32> to vector<15x4xf32>
    %13 = tpu.concatenate %12, %7 in 0 : vector<15x4xf32>, vector<1x4xf32> -> vector<16x4xf32>
    %14 = tpu.concatenate %11, %9, %13 in 1 : vector<16x4xf32>, vector<16x4xf32>, vector<16x4xf32> -> vector<16x12xf32>
    %c1 = arith.constant 1 : index
    %c0_10 = arith.constant 0 : index
    %c0_11 = arith.constant 0 : index
    %15 = vector.load %arg0[%c1, %c0_10, %c0_11] : memref<2x16x4xf32, #tpu.memory_space<vmem>>, vector<1x16x4xf32>
    %16 = vector.shape_cast %15 : vector<1x16x4xf32> to vector<16x4xf32>
    %17 = vector.extract_strided_slice %16 {offsets = [0, 0], sizes = [15, 4], strides = [1, 1]} : vector<16x4xf32> to vector<15x4xf32>
    %18 = tpu.concatenate %7, %17 in 0 : vector<1x4xf32>, vector<15x4xf32> -> vector<16x4xf32>
    %19 = vector.extract_strided_slice %16 {offsets = [1, 0], sizes = [15, 4], strides = [1, 1]} : vector<16x4xf32> to vector<15x4xf32>
    %20 = tpu.concatenate %19, %7 in 0 : vector<15x4xf32>, vector<1x4xf32> -> vector<16x4xf32>
    %21 = tpu.concatenate %18, %16, %20 in 1 : vector<16x4xf32>, vector<16x4xf32>, vector<16x4xf32> -> vector<16x12xf32>
    %22 = tpu.concatenate %14, %21 in 0 : vector<16x12xf32>, vector<16x12xf32> -> vector<32x12xf32>
    %cst_12 = arith.constant dense<0.000000e+00> : vector<32x16xf32>
    %23 = tpu.matmul %22, %0, %cst_12 {dimension_numbers = #tpu.dot_dimension_numbers<[1], [0], [0], [1], [0, 0, 1, 1], [], []>, precision = #tpu.contract_precision<fp32>} : vector<32x12xf32>, vector<12x16xf32>, vector<32x16xf32> -> vector<32x16xf32>
    %24 = vector.broadcast %1 : vector<1x16xf32> to vector<32x16xf32>
    %25 = arith.addf %23, %24 : vector<32x16xf32>
    %cst_13 = arith.constant 0.000000e+00 : f32
    %26 = vector.broadcast %cst_13 : f32 to vector<32x16xf32>
    %27 = arith.maximumf %25, %26 : vector<32x16xf32>
    %28 = vector.extract_strided_slice %27 {offsets = [0, 0], sizes = [1, 16], strides = [1, 1]} : vector<32x16xf32> to vector<1x16xf32>
    %29 = vector.extract_strided_slice %27 {offsets = [1, 0], sizes = [1, 16], strides = [1, 1]} : vector<32x16xf32> to vector<1x16xf32>
    %30 = arith.maximumf %28, %29 : vector<1x16xf32>
    %31 = vector.extract_strided_slice %27 {offsets = [2, 0], sizes = [1, 16], strides = [1, 1]} : vector<32x16xf32> to vector<1x16xf32>
    %32 = vector.extract_strided_slice %27 {offsets = [3, 0], sizes = [1, 16], strides = [1, 1]} : vector<32x16xf32> to vector<1x16xf32>
    %33 = arith.maximumf %31, %32 : vector<1x16xf32>
    %34 = vector.extract_strided_slice %27 {offsets = [4, 0], sizes = [1, 16], strides = [1, 1]} : vector<32x16xf32> to vector<1x16xf32>
    %35 = vector.extract_strided_slice %27 {offsets = [5, 0], sizes = [1, 16], strides = [1, 1]} : vector<32x16xf32> to vector<1x16xf32>
    %36 = arith.maximumf %34, %35 : vector<1x16xf32>
    %37 = vector.extract_strided_slice %27 {offsets = [6, 0], sizes = [1, 16], strides = [1, 1]} : vector<32x16xf32> to vector<1x16xf32>
    %38 = vector.extract_strided_slice %27 {offsets = [7, 0], sizes = [1, 16], strides = [1, 1]} : vector<32x16xf32> to vector<1x16xf32>
    %39 = arith.maximumf %37, %38 : vector<1x16xf32>
    %40 = vector.extract_strided_slice %27 {offsets = [8, 0], sizes = [1, 16], strides = [1, 1]} : vector<32x16xf32> to vector<1x16xf32>
    %41 = vector.extract_strided_slice %27 {offsets = [9, 0], sizes = [1, 16], strides = [1, 1]} : vector<32x16xf32> to vector<1x16xf32>
    %42 = arith.maximumf %40, %41 : vector<1x16xf32>
    %43 = vector.extract_strided_slice %27 {offsets = [10, 0], sizes = [1, 16], strides = [1, 1]} : vector<32x16xf32> to vector<1x16xf32>
    %44 = vector.extract_strided_slice %27 {offsets = [11, 0], sizes = [1, 16], strides = [1, 1]} : vector<32x16xf32> to vector<1x16xf32>
    %45 = arith.maximumf %43, %44 : vector<1x16xf32>
    %46 = vector.extract_strided_slice %27 {offsets = [12, 0], sizes = [1, 16], strides = [1, 1]} : vector<32x16xf32> to vector<1x16xf32>
    %47 = vector.extract_strided_slice %27 {offsets = [13, 0], sizes = [1, 16], strides = [1, 1]} : vector<32x16xf32> to vector<1x16xf32>
    %48 = arith.maximumf %46, %47 : vector<1x16xf32>
    %49 = vector.extract_strided_slice %27 {offsets = [14, 0], sizes = [1, 16], strides = [1, 1]} : vector<32x16xf32> to vector<1x16xf32>
    %50 = vector.extract_strided_slice %27 {offsets = [15, 0], sizes = [1, 16], strides = [1, 1]} : vector<32x16xf32> to vector<1x16xf32>
    %51 = arith.maximumf %49, %50 : vector<1x16xf32>
    %52 = vector.extract_strided_slice %27 {offsets = [16, 0], sizes = [1, 16], strides = [1, 1]} : vector<32x16xf32> to vector<1x16xf32>
    %53 = vector.extract_strided_slice %27 {offsets = [17, 0], sizes = [1, 16], strides = [1, 1]} : vector<32x16xf32> to vector<1x16xf32>
    %54 = arith.maximumf %52, %53 : vector<1x16xf32>
    %55 = vector.extract_strided_slice %27 {offsets = [18, 0], sizes = [1, 16], strides = [1, 1]} : vector<32x16xf32> to vector<1x16xf32>
    %56 = vector.extract_strided_slice %27 {offsets = [19, 0], sizes = [1, 16], strides = [1, 1]} : vector<32x16xf32> to vector<1x16xf32>
    %57 = arith.maximumf %55, %56 : vector<1x16xf32>
    %58 = vector.extract_strided_slice %27 {offsets = [20, 0], sizes = [1, 16], strides = [1, 1]} : vector<32x16xf32> to vector<1x16xf32>
    %59 = vector.extract_strided_slice %27 {offsets = [21, 0], sizes = [1, 16], strides = [1, 1]} : vector<32x16xf32> to vector<1x16xf32>
    %60 = arith.maximumf %58, %59 : vector<1x16xf32>
    %61 = vector.extract_strided_slice %27 {offsets = [22, 0], sizes = [1, 16], strides = [1, 1]} : vector<32x16xf32> to vector<1x16xf32>
    %62 = vector.extract_strided_slice %27 {offsets = [23, 0], sizes = [1, 16], strides = [1, 1]} : vector<32x16xf32> to vector<1x16xf32>
    %63 = arith.maximumf %61, %62 : vector<1x16xf32>
    %64 = vector.extract_strided_slice %27 {offsets = [24, 0], sizes = [1, 16], strides = [1, 1]} : vector<32x16xf32> to vector<1x16xf32>
    %65 = vector.extract_strided_slice %27 {offsets = [25, 0], sizes = [1, 16], strides = [1, 1]} : vector<32x16xf32> to vector<1x16xf32>
    %66 = arith.maximumf %64, %65 : vector<1x16xf32>
    %67 = vector.extract_strided_slice %27 {offsets = [26, 0], sizes = [1, 16], strides = [1, 1]} : vector<32x16xf32> to vector<1x16xf32>
    %68 = vector.extract_strided_slice %27 {offsets = [27, 0], sizes = [1, 16], strides = [1, 1]} : vector<32x16xf32> to vector<1x16xf32>
    %69 = arith.maximumf %67, %68 : vector<1x16xf32>
    %70 = vector.extract_strided_slice %27 {offsets = [28, 0], sizes = [1, 16], strides = [1, 1]} : vector<32x16xf32> to vector<1x16xf32>
    %71 = vector.extract_strided_slice %27 {offsets = [29, 0], sizes = [1, 16], strides = [1, 1]} : vector<32x16xf32> to vector<1x16xf32>
    %72 = arith.maximumf %70, %71 : vector<1x16xf32>
    %73 = vector.extract_strided_slice %27 {offsets = [30, 0], sizes = [1, 16], strides = [1, 1]} : vector<32x16xf32> to vector<1x16xf32>
    %74 = vector.extract_strided_slice %27 {offsets = [31, 0], sizes = [1, 16], strides = [1, 1]} : vector<32x16xf32> to vector<1x16xf32>
    %75 = arith.maximumf %73, %74 : vector<1x16xf32>
    %76 = tpu.concatenate %30, %33, %36, %39, %42, %45, %48, %51, %54, %57, %60, %63, %66, %69, %72, %75 in 0 : vector<1x16xf32>, vector<1x16xf32>, vector<1x16xf32>, vector<1x16xf32>, vector<1x16xf32>, vector<1x16xf32>, vector<1x16xf32>, vector<1x16xf32>, vector<1x16xf32>, vector<1x16xf32>, vector<1x16xf32>, vector<1x16xf32>, vector<1x16xf32>, vector<1x16xf32>, vector<1x16xf32>, vector<1x16xf32> -> vector<16x16xf32>
    %cst_14 = arith.constant dense<0.000000e+00> : vector<16x128xf32>
    %77 = tpu.matmul %76, %2, %cst_14 {dimension_numbers = #tpu.dot_dimension_numbers<[1], [0], [0], [1], [0, 0, 1, 1], [], []>, precision = #tpu.contract_precision<fp32>} : vector<16x16xf32>, vector<16x128xf32>, vector<16x128xf32> -> vector<16x128xf32>
    %78 = vector.broadcast %4 : vector<1x128xf32> to vector<16x128xf32>
    %79 = arith.addf %77, %78 : vector<16x128xf32>
    %80 = vector.extract_strided_slice %79 {offsets = [0, 0], sizes = [1, 128], strides = [1, 1]} : vector<16x128xf32> to vector<1x128xf32>
    %81 = vector.extract_strided_slice %79 {offsets = [8, 0], sizes = [1, 128], strides = [1, 1]} : vector<16x128xf32> to vector<1x128xf32>
    %82 = tpu.concatenate %80, %81 in 0 : vector<1x128xf32>, vector<1x128xf32> -> vector<2x128xf32>
    %83 = vector.extract_strided_slice %79 {offsets = [1, 0], sizes = [1, 128], strides = [1, 1]} : vector<16x128xf32> to vector<1x128xf32>
    %84 = vector.extract_strided_slice %79 {offsets = [9, 0], sizes = [1, 128], strides = [1, 1]} : vector<16x128xf32> to vector<1x128xf32>
    %85 = tpu.concatenate %83, %84 in 0 : vector<1x128xf32>, vector<1x128xf32> -> vector<2x128xf32>
    %86 = vector.extract_strided_slice %79 {offsets = [2, 0], sizes = [1, 128], strides = [1, 1]} : vector<16x128xf32> to vector<1x128xf32>
    %87 = vector.extract_strided_slice %79 {offsets = [10, 0], sizes = [1, 128], strides = [1, 1]} : vector<16x128xf32> to vector<1x128xf32>
    %88 = tpu.concatenate %86, %87 in 0 : vector<1x128xf32>, vector<1x128xf32> -> vector<2x128xf32>
    %89 = vector.extract_strided_slice %79 {offsets = [3, 0], sizes = [1, 128], strides = [1, 1]} : vector<16x128xf32> to vector<1x128xf32>
    %90 = vector.extract_strided_slice %79 {offsets = [11, 0], sizes = [1, 128], strides = [1, 1]} : vector<16x128xf32> to vector<1x128xf32>
    %91 = tpu.concatenate %89, %90 in 0 : vector<1x128xf32>, vector<1x128xf32> -> vector<2x128xf32>
    %92 = vector.extract_strided_slice %79 {offsets = [4, 0], sizes = [1, 128], strides = [1, 1]} : vector<16x128xf32> to vector<1x128xf32>
    %93 = vector.extract_strided_slice %79 {offsets = [12, 0], sizes = [1, 128], strides = [1, 1]} : vector<16x128xf32> to vector<1x128xf32>
    %94 = tpu.concatenate %92, %93 in 0 : vector<1x128xf32>, vector<1x128xf32> -> vector<2x128xf32>
    %95 = vector.extract_strided_slice %79 {offsets = [5, 0], sizes = [1, 128], strides = [1, 1]} : vector<16x128xf32> to vector<1x128xf32>
    %96 = vector.extract_strided_slice %79 {offsets = [13, 0], sizes = [1, 128], strides = [1, 1]} : vector<16x128xf32> to vector<1x128xf32>
    %97 = tpu.concatenate %95, %96 in 0 : vector<1x128xf32>, vector<1x128xf32> -> vector<2x128xf32>
    %98 = vector.extract_strided_slice %79 {offsets = [6, 0], sizes = [1, 128], strides = [1, 1]} : vector<16x128xf32> to vector<1x128xf32>
    %99 = vector.extract_strided_slice %79 {offsets = [14, 0], sizes = [1, 128], strides = [1, 1]} : vector<16x128xf32> to vector<1x128xf32>
    %100 = tpu.concatenate %98, %99 in 0 : vector<1x128xf32>, vector<1x128xf32> -> vector<2x128xf32>
    %101 = vector.extract_strided_slice %79 {offsets = [7, 0], sizes = [1, 128], strides = [1, 1]} : vector<16x128xf32> to vector<1x128xf32>
    %102 = vector.extract_strided_slice %79 {offsets = [15, 0], sizes = [1, 128], strides = [1, 1]} : vector<16x128xf32> to vector<1x128xf32>
    %103 = tpu.concatenate %101, %102 in 0 : vector<1x128xf32>, vector<1x128xf32> -> vector<2x128xf32>
    %cst_15 = arith.constant 0.000000e+00 : f32
    %104 = vector.broadcast %cst_15 : f32 to vector<2x32xf32>
    %cst_16 = arith.constant 5.000000e-01 : f32
    %105 = vector.broadcast %cst_16 : f32 to vector<2x128xf32>
    %106 = arith.mulf %105, %82 : vector<2x128xf32>
    %107 = math.tanh %106 : vector<2x128xf32>
    %cst_17 = arith.constant 5.000000e-01 : f32
    %108 = vector.broadcast %cst_17 : f32 to vector<2x128xf32>
    %109 = arith.mulf %108, %107 : vector<2x128xf32>
    %cst_18 = arith.constant 5.000000e-01 : f32
    %110 = vector.broadcast %cst_18 : f32 to vector<2x128xf32>
    %111 = arith.addf %109, %110 : vector<2x128xf32>
    %112 = math.tanh %82 : vector<2x128xf32>
    %113 = vector.extract_strided_slice %111 {offsets = [0, 0], sizes = [2, 32], strides = [1, 1]} : vector<2x128xf32> to vector<2x32xf32>
    %114 = vector.extract_strided_slice %111 {offsets = [0, 32], sizes = [2, 32], strides = [1, 1]} : vector<2x128xf32> to vector<2x32xf32>
    %115 = vector.extract_strided_slice %112 {offsets = [0, 64], sizes = [2, 32], strides = [1, 1]} : vector<2x128xf32> to vector<2x32xf32>
    %116 = vector.extract_strided_slice %111 {offsets = [0, 96], sizes = [2, 32], strides = [1, 1]} : vector<2x128xf32> to vector<2x32xf32>
    %117 = arith.mulf %114, %104 : vector<2x32xf32>
    %118 = arith.mulf %113, %115 : vector<2x32xf32>
    %119 = arith.addf %117, %118 : vector<2x32xf32>
    %120 = math.tanh %119 : vector<2x32xf32>
    %121 = arith.mulf %116, %120 : vector<2x32xf32>
    %cst_19 = arith.constant dense<0.000000e+00> : vector<2x128xf32>
    %122 = tpu.matmul %121, %3, %cst_19 {dimension_numbers = #tpu.dot_dimension_numbers<[1], [0], [0], [1], [0, 0, 1, 1], [], []>, precision = #tpu.contract_precision<fp32>} : vector<2x32xf32>, vector<32x128xf32>, vector<2x128xf32> -> vector<2x128xf32>
    %123 = arith.addf %85, %122 : vector<2x128xf32>
    %cst_20 = arith.constant 5.000000e-01 : f32
    %124 = vector.broadcast %cst_20 : f32 to vector<2x128xf32>
    %125 = arith.mulf %124, %123 : vector<2x128xf32>
    %126 = math.tanh %125 : vector<2x128xf32>
    %cst_21 = arith.constant 5.000000e-01 : f32
    %127 = vector.broadcast %cst_21 : f32 to vector<2x128xf32>
    %128 = arith.mulf %127, %126 : vector<2x128xf32>
    %cst_22 = arith.constant 5.000000e-01 : f32
    %129 = vector.broadcast %cst_22 : f32 to vector<2x128xf32>
    %130 = arith.addf %128, %129 : vector<2x128xf32>
    %131 = math.tanh %123 : vector<2x128xf32>
    %132 = vector.extract_strided_slice %130 {offsets = [0, 0], sizes = [2, 32], strides = [1, 1]} : vector<2x128xf32> to vector<2x32xf32>
    %133 = vector.extract_strided_slice %130 {offsets = [0, 32], sizes = [2, 32], strides = [1, 1]} : vector<2x128xf32> to vector<2x32xf32>
    %134 = vector.extract_strided_slice %131 {offsets = [0, 64], sizes = [2, 32], strides = [1, 1]} : vector<2x128xf32> to vector<2x32xf32>
    %135 = vector.extract_strided_slice %130 {offsets = [0, 96], sizes = [2, 32], strides = [1, 1]} : vector<2x128xf32> to vector<2x32xf32>
    %136 = arith.mulf %133, %119 : vector<2x32xf32>
    %137 = arith.mulf %132, %134 : vector<2x32xf32>
    %138 = arith.addf %136, %137 : vector<2x32xf32>
    %139 = math.tanh %138 : vector<2x32xf32>
    %140 = arith.mulf %135, %139 : vector<2x32xf32>
    %cst_23 = arith.constant dense<0.000000e+00> : vector<2x128xf32>
    %141 = tpu.matmul %140, %3, %cst_23 {dimension_numbers = #tpu.dot_dimension_numbers<[1], [0], [0], [1], [0, 0, 1, 1], [], []>, precision = #tpu.contract_precision<fp32>} : vector<2x32xf32>, vector<32x128xf32>, vector<2x128xf32> -> vector<2x128xf32>
    %142 = arith.addf %88, %141 : vector<2x128xf32>
    %cst_24 = arith.constant 5.000000e-01 : f32
    %143 = vector.broadcast %cst_24 : f32 to vector<2x128xf32>
    %144 = arith.mulf %143, %142 : vector<2x128xf32>
    %145 = math.tanh %144 : vector<2x128xf32>
    %cst_25 = arith.constant 5.000000e-01 : f32
    %146 = vector.broadcast %cst_25 : f32 to vector<2x128xf32>
    %147 = arith.mulf %146, %145 : vector<2x128xf32>
    %cst_26 = arith.constant 5.000000e-01 : f32
    %148 = vector.broadcast %cst_26 : f32 to vector<2x128xf32>
    %149 = arith.addf %147, %148 : vector<2x128xf32>
    %150 = math.tanh %142 : vector<2x128xf32>
    %151 = vector.extract_strided_slice %149 {offsets = [0, 0], sizes = [2, 32], strides = [1, 1]} : vector<2x128xf32> to vector<2x32xf32>
    %152 = vector.extract_strided_slice %149 {offsets = [0, 32], sizes = [2, 32], strides = [1, 1]} : vector<2x128xf32> to vector<2x32xf32>
    %153 = vector.extract_strided_slice %150 {offsets = [0, 64], sizes = [2, 32], strides = [1, 1]} : vector<2x128xf32> to vector<2x32xf32>
    %154 = vector.extract_strided_slice %149 {offsets = [0, 96], sizes = [2, 32], strides = [1, 1]} : vector<2x128xf32> to vector<2x32xf32>
    %155 = arith.mulf %152, %138 : vector<2x32xf32>
    %156 = arith.mulf %151, %153 : vector<2x32xf32>
    %157 = arith.addf %155, %156 : vector<2x32xf32>
    %158 = math.tanh %157 : vector<2x32xf32>
    %159 = arith.mulf %154, %158 : vector<2x32xf32>
    %cst_27 = arith.constant dense<0.000000e+00> : vector<2x128xf32>
    %160 = tpu.matmul %159, %3, %cst_27 {dimension_numbers = #tpu.dot_dimension_numbers<[1], [0], [0], [1], [0, 0, 1, 1], [], []>, precision = #tpu.contract_precision<fp32>} : vector<2x32xf32>, vector<32x128xf32>, vector<2x128xf32> -> vector<2x128xf32>
    %161 = arith.addf %91, %160 : vector<2x128xf32>
    %cst_28 = arith.constant 5.000000e-01 : f32
    %162 = vector.broadcast %cst_28 : f32 to vector<2x128xf32>
    %163 = arith.mulf %162, %161 : vector<2x128xf32>
    %164 = math.tanh %163 : vector<2x128xf32>
    %cst_29 = arith.constant 5.000000e-01 : f32
    %165 = vector.broadcast %cst_29 : f32 to vector<2x128xf32>
    %166 = arith.mulf %165, %164 : vector<2x128xf32>
    %cst_30 = arith.constant 5.000000e-01 : f32
    %167 = vector.broadcast %cst_30 : f32 to vector<2x128xf32>
    %168 = arith.addf %166, %167 : vector<2x128xf32>
    %169 = math.tanh %161 : vector<2x128xf32>
    %170 = vector.extract_strided_slice %168 {offsets = [0, 0], sizes = [2, 32], strides = [1, 1]} : vector<2x128xf32> to vector<2x32xf32>
    %171 = vector.extract_strided_slice %168 {offsets = [0, 32], sizes = [2, 32], strides = [1, 1]} : vector<2x128xf32> to vector<2x32xf32>
    %172 = vector.extract_strided_slice %169 {offsets = [0, 64], sizes = [2, 32], strides = [1, 1]} : vector<2x128xf32> to vector<2x32xf32>
    %173 = vector.extract_strided_slice %168 {offsets = [0, 96], sizes = [2, 32], strides = [1, 1]} : vector<2x128xf32> to vector<2x32xf32>
    %174 = arith.mulf %171, %157 : vector<2x32xf32>
    %175 = arith.mulf %170, %172 : vector<2x32xf32>
    %176 = arith.addf %174, %175 : vector<2x32xf32>
    %177 = math.tanh %176 : vector<2x32xf32>
    %178 = arith.mulf %173, %177 : vector<2x32xf32>
    %cst_31 = arith.constant dense<0.000000e+00> : vector<2x128xf32>
    %179 = tpu.matmul %178, %3, %cst_31 {dimension_numbers = #tpu.dot_dimension_numbers<[1], [0], [0], [1], [0, 0, 1, 1], [], []>, precision = #tpu.contract_precision<fp32>} : vector<2x32xf32>, vector<32x128xf32>, vector<2x128xf32> -> vector<2x128xf32>
    %180 = arith.addf %94, %179 : vector<2x128xf32>
    %cst_32 = arith.constant 5.000000e-01 : f32
    %181 = vector.broadcast %cst_32 : f32 to vector<2x128xf32>
    %182 = arith.mulf %181, %180 : vector<2x128xf32>
    %183 = math.tanh %182 : vector<2x128xf32>
    %cst_33 = arith.constant 5.000000e-01 : f32
    %184 = vector.broadcast %cst_33 : f32 to vector<2x128xf32>
    %185 = arith.mulf %184, %183 : vector<2x128xf32>
    %cst_34 = arith.constant 5.000000e-01 : f32
    %186 = vector.broadcast %cst_34 : f32 to vector<2x128xf32>
    %187 = arith.addf %185, %186 : vector<2x128xf32>
    %188 = math.tanh %180 : vector<2x128xf32>
    %189 = vector.extract_strided_slice %187 {offsets = [0, 0], sizes = [2, 32], strides = [1, 1]} : vector<2x128xf32> to vector<2x32xf32>
    %190 = vector.extract_strided_slice %187 {offsets = [0, 32], sizes = [2, 32], strides = [1, 1]} : vector<2x128xf32> to vector<2x32xf32>
    %191 = vector.extract_strided_slice %188 {offsets = [0, 64], sizes = [2, 32], strides = [1, 1]} : vector<2x128xf32> to vector<2x32xf32>
    %192 = vector.extract_strided_slice %187 {offsets = [0, 96], sizes = [2, 32], strides = [1, 1]} : vector<2x128xf32> to vector<2x32xf32>
    %193 = arith.mulf %190, %176 : vector<2x32xf32>
    %194 = arith.mulf %189, %191 : vector<2x32xf32>
    %195 = arith.addf %193, %194 : vector<2x32xf32>
    %196 = math.tanh %195 : vector<2x32xf32>
    %197 = arith.mulf %192, %196 : vector<2x32xf32>
    %cst_35 = arith.constant dense<0.000000e+00> : vector<2x128xf32>
    %198 = tpu.matmul %197, %3, %cst_35 {dimension_numbers = #tpu.dot_dimension_numbers<[1], [0], [0], [1], [0, 0, 1, 1], [], []>, precision = #tpu.contract_precision<fp32>} : vector<2x32xf32>, vector<32x128xf32>, vector<2x128xf32> -> vector<2x128xf32>
    %199 = arith.addf %97, %198 : vector<2x128xf32>
    %cst_36 = arith.constant 5.000000e-01 : f32
    %200 = vector.broadcast %cst_36 : f32 to vector<2x128xf32>
    %201 = arith.mulf %200, %199 : vector<2x128xf32>
    %202 = math.tanh %201 : vector<2x128xf32>
    %cst_37 = arith.constant 5.000000e-01 : f32
    %203 = vector.broadcast %cst_37 : f32 to vector<2x128xf32>
    %204 = arith.mulf %203, %202 : vector<2x128xf32>
    %cst_38 = arith.constant 5.000000e-01 : f32
    %205 = vector.broadcast %cst_38 : f32 to vector<2x128xf32>
    %206 = arith.addf %204, %205 : vector<2x128xf32>
    %207 = math.tanh %199 : vector<2x128xf32>
    %208 = vector.extract_strided_slice %206 {offsets = [0, 0], sizes = [2, 32], strides = [1, 1]} : vector<2x128xf32> to vector<2x32xf32>
    %209 = vector.extract_strided_slice %206 {offsets = [0, 32], sizes = [2, 32], strides = [1, 1]} : vector<2x128xf32> to vector<2x32xf32>
    %210 = vector.extract_strided_slice %207 {offsets = [0, 64], sizes = [2, 32], strides = [1, 1]} : vector<2x128xf32> to vector<2x32xf32>
    %211 = vector.extract_strided_slice %206 {offsets = [0, 96], sizes = [2, 32], strides = [1, 1]} : vector<2x128xf32> to vector<2x32xf32>
    %212 = arith.mulf %209, %195 : vector<2x32xf32>
    %213 = arith.mulf %208, %210 : vector<2x32xf32>
    %214 = arith.addf %212, %213 : vector<2x32xf32>
    %215 = math.tanh %214 : vector<2x32xf32>
    %216 = arith.mulf %211, %215 : vector<2x32xf32>
    %cst_39 = arith.constant dense<0.000000e+00> : vector<2x128xf32>
    %217 = tpu.matmul %216, %3, %cst_39 {dimension_numbers = #tpu.dot_dimension_numbers<[1], [0], [0], [1], [0, 0, 1, 1], [], []>, precision = #tpu.contract_precision<fp32>} : vector<2x32xf32>, vector<32x128xf32>, vector<2x128xf32> -> vector<2x128xf32>
    %218 = arith.addf %100, %217 : vector<2x128xf32>
    %cst_40 = arith.constant 5.000000e-01 : f32
    %219 = vector.broadcast %cst_40 : f32 to vector<2x128xf32>
    %220 = arith.mulf %219, %218 : vector<2x128xf32>
    %221 = math.tanh %220 : vector<2x128xf32>
    %cst_41 = arith.constant 5.000000e-01 : f32
    %222 = vector.broadcast %cst_41 : f32 to vector<2x128xf32>
    %223 = arith.mulf %222, %221 : vector<2x128xf32>
    %cst_42 = arith.constant 5.000000e-01 : f32
    %224 = vector.broadcast %cst_42 : f32 to vector<2x128xf32>
    %225 = arith.addf %223, %224 : vector<2x128xf32>
    %226 = math.tanh %218 : vector<2x128xf32>
    %227 = vector.extract_strided_slice %225 {offsets = [0, 0], sizes = [2, 32], strides = [1, 1]} : vector<2x128xf32> to vector<2x32xf32>
    %228 = vector.extract_strided_slice %225 {offsets = [0, 32], sizes = [2, 32], strides = [1, 1]} : vector<2x128xf32> to vector<2x32xf32>
    %229 = vector.extract_strided_slice %226 {offsets = [0, 64], sizes = [2, 32], strides = [1, 1]} : vector<2x128xf32> to vector<2x32xf32>
    %230 = vector.extract_strided_slice %225 {offsets = [0, 96], sizes = [2, 32], strides = [1, 1]} : vector<2x128xf32> to vector<2x32xf32>
    %231 = arith.mulf %228, %214 : vector<2x32xf32>
    %232 = arith.mulf %227, %229 : vector<2x32xf32>
    %233 = arith.addf %231, %232 : vector<2x32xf32>
    %234 = math.tanh %233 : vector<2x32xf32>
    %235 = arith.mulf %230, %234 : vector<2x32xf32>
    %cst_43 = arith.constant dense<0.000000e+00> : vector<2x128xf32>
    %236 = tpu.matmul %235, %3, %cst_43 {dimension_numbers = #tpu.dot_dimension_numbers<[1], [0], [0], [1], [0, 0, 1, 1], [], []>, precision = #tpu.contract_precision<fp32>} : vector<2x32xf32>, vector<32x128xf32>, vector<2x128xf32> -> vector<2x128xf32>
    %237 = arith.addf %103, %236 : vector<2x128xf32>
    %cst_44 = arith.constant 5.000000e-01 : f32
    %238 = vector.broadcast %cst_44 : f32 to vector<2x128xf32>
    %239 = arith.mulf %238, %237 : vector<2x128xf32>
    %240 = math.tanh %239 : vector<2x128xf32>
    %cst_45 = arith.constant 5.000000e-01 : f32
    %241 = vector.broadcast %cst_45 : f32 to vector<2x128xf32>
    %242 = arith.mulf %241, %240 : vector<2x128xf32>
    %cst_46 = arith.constant 5.000000e-01 : f32
    %243 = vector.broadcast %cst_46 : f32 to vector<2x128xf32>
    %244 = arith.addf %242, %243 : vector<2x128xf32>
    %245 = math.tanh %237 : vector<2x128xf32>
    %246 = vector.extract_strided_slice %244 {offsets = [0, 0], sizes = [2, 32], strides = [1, 1]} : vector<2x128xf32> to vector<2x32xf32>
    %247 = vector.extract_strided_slice %244 {offsets = [0, 32], sizes = [2, 32], strides = [1, 1]} : vector<2x128xf32> to vector<2x32xf32>
    %248 = vector.extract_strided_slice %245 {offsets = [0, 64], sizes = [2, 32], strides = [1, 1]} : vector<2x128xf32> to vector<2x32xf32>
    %249 = vector.extract_strided_slice %244 {offsets = [0, 96], sizes = [2, 32], strides = [1, 1]} : vector<2x128xf32> to vector<2x32xf32>
    %250 = arith.mulf %247, %233 : vector<2x32xf32>
    %251 = arith.mulf %246, %248 : vector<2x32xf32>
    %252 = arith.addf %250, %251 : vector<2x32xf32>
    %253 = math.tanh %252 : vector<2x32xf32>
    %254 = arith.mulf %249, %253 : vector<2x32xf32>
    %cst_47 = arith.constant dense<0.000000e+00> : vector<2x8xf32>
    %255 = tpu.matmul %254, %5, %cst_47 {dimension_numbers = #tpu.dot_dimension_numbers<[1], [0], [0], [1], [0, 0, 1, 1], [], []>, precision = #tpu.contract_precision<fp32>} : vector<2x32xf32>, vector<32x8xf32>, vector<2x8xf32> -> vector<2x8xf32>
    %256 = vector.broadcast %6 : vector<1x8xf32> to vector<2x8xf32>
    %257 = arith.addf %255, %256 : vector<2x8xf32>
    %c0_48 = arith.constant 0 : index
    %c0_49 = arith.constant 0 : index
    %258 = vector.load %arg2[%c0_48, %c0_49] : memref<2x8xf32, #tpu.memory_space<vmem>>, vector<2x8xf32>
    tpu.vector_store %arg2[%c0_48, %c0_49], %257 {strides = array<i32>} : memref<2x8xf32, #tpu.memory_space<vmem>>, vector<2x8xf32>,
    return
  }
}

</mosaic_0001>

<bundles_post_ra>
// kernel: forward.1
= control target key start
LH: loop header
LB: loop body
LE: loop exit
PB: predicated region body
PF: predicated region fallthrough
CT: control target
= control target key end

     0   :  { %7 = vsyncpa [#allocation3], 0  ;;  %s2906_s0 = inlined_call_operand.vmem [shape: f32[2,16,4], index: 0, kind: input, shape index: {}]   ;;  %s2907_s1 = inlined_call_operand.hbm [shape: f32[120,128], index: 1, kind: input, shape index: {}]   ;;  %s2908_s2 = inlined_call_operand.hbm [shape: f32[2,8], index: 2, kind: output, shape index: {}]  }
   0x1   :  { %8 = vsyncpa [#allocation4], 0  ;;  %s15_s11 = sshll.u32 %s2907_s1, 4  ;;  %s2524_s12 = smov [#allocation2]   ;;  %s16_s11 = int_to_ptr.hbm [resolvable:$true] %s15_s11 }
   0x2   :  { %s17_s13 = sshll.u32 %s2524_s12, 4  ;;  %s2525_s14 = smov 128   ;;  %s18_s13 = int_to_ptr.vmem [resolvable:$true] %s17_s13 }
   0x3   :  { %s2526_s15 = smov 8  }
   0x4   :  { %23 = dma.hbm_to_vmem [thread:$0]  %s16_s11, 1920, %s18_s13, [#allocation3], %s2525_s14, %s2525_s14, %s2526_s15  }
   0x5   :  { %2520 = dma.done.wait [#allocation3], 1920  }
   0x6   :  { %2521 = vsyncadd [#allocation3], 4294965376  ;;  %v44_v0 = vld [vmem:[%s2906_s0 + $0x8] sm:$0xff]  ;;  %v43_v1 = vld [vmem:[%s2906_s0] sm:$0xff]  ;;  %s2527_s20 = smov 4   ;;  %vm54_vm0 = vcmask 1046528  }
   0x7   :  { %62 = vrot.lane.b32.xlu1 %v44_v0, %s2527_s20  ;;  %60 = vrot.lane.b32.xlu0 %v43_v1, %s2527_s20  ;;  %v2412_v2 = vld [vmem:[%s2906_s0 + $0x10] sm:$0xff]  ;;  %v55_v3 = vrot.slane %v43_v1, 1  ;;  %v56_v4 = vrot.slane %v44_v0, 1  ;;  %v2413_v5 = vld [vmem:[%s2906_s0 + $0x18] sm:$0xff]  ;;  %v49_v12 = vrot.slane %v44_v0, 7  ;;  %v48_v13 = vrot.slane %v43_v1, 7 }
   0x8   :  { %95 = vrot.lane.b32.xlu2 %v2412_v2, %s2527_s20  ;;  %v90_v6 = vrot.slane %v2412_v2, 1  ;;  %v91_v7 = vrot.slane %v2413_v5, 1  ;;  %v29_v14 = vld [vmem:[#allocation2 + $0x8] sm:$0xf]  ;;  %vm126_vm1 = vcmask 1043456   ;;  %vm47_vm2 = vcmask 1040384  }
   0x9   :  { %v59_v8 = vsel %vm54_vm0, %v56_v4, 0.0  ;;  %v57_v9 = vsel %vm54_vm0, %v55_v3, %v56_v4  ;;  %v128_v15 = vsel %vm126_vm1, %v29_v14, 0  ;;  %v50_v16 = vsel %vm47_vm2, %v48_v13, %v49_v12  ;;  %v28_v18 = vld [vmem:[#allocation2] sm:$0xff]  ;;  %v2421_v14 = vld [vmem:[#allocation2 + $0x10] ss:$0 sm:$0xff]  ;;  %s2528_s0 = smov 64  }
   0xa   :  { %v92_v10 = vsel %vm54_vm0, %v90_v6, %v91_v7  ;;  %v94_v11 = vsel %vm54_vm0, %v91_v7, 0.0  ;;  %v144_v17 = vand.u32 4294901760, %v128_v15  ;;  %v146_v20 = vand.u32 4294901760, %v28_v18  ;;  %s2529_s24 = smov 32   ;;  %s2530_s25 = smov [#allocation5]  }
   0xb   :  { %v85_v28 = vrot.slane %v2413_v5, 7  ;;  %v84_v29 = vrot.slane %v2412_v2, 7  ;;  %vm73_vm3 = vcmask 31744   ;;  %v53_v34 = vsel %vm47_vm2, 0.0, %v48_v13  ;;  %s2400_s26 = sshll.u32 %s2530_s25, 4  ;;  %s2402_s29 = sshll.u32 %s2908_s2, 4  ;;  %s2401_s26 = int_to_ptr.vmem [resolvable:$true] %s2400_s26  ;;  %s2403_s29 = int_to_ptr.hbm [resolvable:$true] %s2402_s29 }
   0xc   :  { %v196_v19 = vsub.f32 %v128_v15, %v144_v17  ;;  %280 = vmatpush.msra.mxu3 %v144_v17  ;;  %145 = vmatpush.msra.mxu0 %v144_v17  ;;  %v202_v22 = vsub.f32 %v28_v18, %v146_v20  ;;  %vm76_vm4 = vcmask 64512   ;;  %vm113_vm5 = vcmask 97280   ;;  %v32_v15 = vld [vmem:[#allocation2 + $0x20] sm:$0xff]  ;;  %v31_v18 = vld [vmem:[#allocation2 + $0x18] sm:$0xff] }
   0xd   :  { %v86_v30 = vsel %vm47_vm2, %v84_v29, %v85_v28  ;;  %v89_v36 = vsel %vm47_vm2, 0.0, %v84_v29  ;;  %vm435_vm6 = vcmask 1041408   ;;  %vm437_vm7 = vcmask 1042432  }
   0xe   :  { %v197_v21 = vand.u32 4294901760, %v196_v19  ;;  %240 = vmatpush.msra.mxu2 %v196_v19  ;;  %282 = vmatpush.msra.mxu3 %v146_v20  ;;  %v203_v24 = vand.u32 4294901760, %v202_v22  ;;  %vm440_vm8 = vcmask 1044480   ;;  %vm442_vm9 = vcmask 1045504  }
   0xf   :  { %69 = vrot.lane.b32.xlu1 %v59_v8, %s2526_s15  ;;  %67 = vrot.lane.b32.xlu0 %v57_v9, %s2526_s15  ;;  %vm453_vm10 = vcmask 130048   ;;  %vm713_vm11 = vcmask 261120   ;;  %vm2393_vm12 = vcmask 58368  }
  0x10   :  { %102 = vrot.lane.b32.xlu2 %v92_v10, %s2526_s15  ;;  %147 = vmatpush.msra.mxu0 %v146_v20  ;;  %v198_v23 = vsub.f32 %v196_v19, %v197_v21  ;;  %v204_v26 = vsub.f32 %v202_v22, %v203_v24 }
  0x11   :  { %243 = vmatpush.msra.mxu2 %v202_v22 }
  0x12   :  { %325 = vmatpush.msrb.mxu0 %v197_v21  ;;  %v199_v25 = vand.u32 4294901760, %v198_v23  ;;  %v205_v27 = vand.u32 4294901760, %v204_v26  ;;  %v476_v21 = vand.u32 4294901760, %v31_v18 }
  0x14   :  { %329 = vmatpush.msrb.mxu0 %v203_v24  ;;  %200 = vmatpush.msra.mxu1 %v199_v25  ;;  %v516_v25 = vsub.f32 %v31_v18, %v476_v21 }
  0x16   :  { %206 = vmatpush.msra.mxu1 %v205_v27  ;;  %v517_v27 = vand.u32 4294901760, %v516_v25 }
  0x17   :  { %97 = vrot.lane.b32.xlu0 %v2413_v5, %s2527_s20  ;;  %104 = vrot.lane.b32.xlu1 %v94_v11, %s2526_s15 }
  0x18   :  { %362 = vmatpush.msrb.mxu1 %v144_v17  ;;  %v474_v17 = vand.u32 4294901760, %v32_v15 }
  0x1a   :  { %364 = vmatpush.msrb.mxu1 %v146_v20  ;;  %475 = vmatpush.msrb.mxu2 %v474_v17  ;;  %v510_v20 = vsub.f32 %v32_v15, %v474_v17 }
  0x1c   :  { %v511_v24 = vand.u32 4294901760, %v510_v20  ;;  %477 = vmatpush.msrb.mxu2 %v476_v21 }
  0x1e   :  { %v512_v26 = vsub.f32 %v510_v20, %v511_v24 }
  0x62   :  { %v96_v31 = vpop.permute.xlu2 %95 }
  0x63   :  { %v108_v42 = vsel %vm73_vm3, %v89_v36, %v96_v31  ;;  %v513_v31 = vand.u32 4294901760, %v512_v26 }
  0x65   :  { %514 = vmatpush.msrb.mxu3 %v513_v31 }
  0x6a   :  { %v103_v45 = vpop.permute.xlu2 %102 }
  0x6b   :  { %v110_v49 = vsel %vm76_vm4, %v108_v42, %v103_v45 }
  0x6c   :  { %v121_v52 = vsel %vm113_vm5, %v110_v49, 0 }
  0x6d   :  { %v164_v57 = vand.u32 4294901760, %v121_v52 }
  0x6f   :  { %v165_v61 = vsub.f32 %v121_v52, %v164_v57 }
  0x71   :  { %v166_v2 = vand.u32 4294901760, %v165_v61 }
  0x73   :  { %v167_v4 = vsub.f32 %v165_v61, %v166_v2 }
  0x75   :  { %v168_v5 = vand.u32 4294901760, %v167_v4 }
  0x79   :  { %v63_v32 = vpop.permute.xlu1 %62  ;;  %v61_v33 = vpop.permute.xlu0 %60 }
  0x7a   :  { %v75_v35 = vsel %vm73_vm3, %v50_v16, %v63_v32  ;;  %v74_v37 = vsel %vm73_vm3, %v53_v34, %v61_v33  ;;  %v518_v32 = vsub.f32 %v516_v25, %v517_v27 }
  0x7c   :  { %v519_v33 = vand.u32 4294901760, %v518_v32 }
  0x7e   :  { %520 = vmatpush.msrb.mxu3 %v519_v33 }
  0x81   :  { %v70_v38 = vpop.permute.xlu1 %69  ;;  %v68_v39 = vpop.permute.xlu0 %67 }
  0x82   :  { %v78_v40 = vsel %vm76_vm4, %v75_v35, %v70_v38  ;;  %v77_v41 = vsel %vm76_vm4, %v74_v37, %v68_v39 }
  0x83   :  { %v118_v43 = vsel %vm113_vm5, %v78_v40, 0  ;;  %v115_v44 = vsel %vm113_vm5, %v77_v41, 0 }
  0x84   :  { %v156_v46 = vand.u32 4294901760, %v118_v43  ;;  %v148_v47 = vand.u32 4294901760, %v115_v44 }
  0x86   :  { %v149_v48 = vsub.f32 %v115_v44, %v148_v47  ;;  %208 = vmatmul.f32.vlgmr.msra.gmra.mxu1 %v148_v47  ;;  %v157_v50 = vsub.f32 %v118_v43, %v156_v46 }
  0x87   :  { %638 = vmatpush.msra.mxu1 %v474_v17 }
  0x88   :  { %246 = vmatmul.f32.vlgmr.msra.gmra.mxu2 %v149_v48  ;;  %v150_v51 = vand.u32 4294901760, %v149_v48  ;;  %v158_v59 = vand.u32 4294901760, %v157_v50 }
  0x89   :  { %v98_v53 = vpop.permute.xlu0 %97  ;;  %v105_v56 = vpop.permute.xlu1 %104  ;;  %640 = vmatpush.msra.mxu1 %v476_v21  ;;  %546 = vmatpush.msra.mxu2 %v510_v20 }
  0x8a   :  { %286 = vmatmul.f32.vlgmr.msra.gmra.mxu3 %v150_v51  ;;  %v151_v54 = vsub.f32 %v149_v48, %v150_v51  ;;  %v109_v55 = vsel %vm73_vm3, %v86_v30, %v98_v53  ;;  %v159_v62 = vsub.f32 %v157_v50, %v158_v59 }
  0x8b   :  { %v111_v60 = vsel %vm76_vm4, %v109_v55, %v105_v56  ;;  %549 = vmatpush.msra.mxu2 %v516_v25  ;;  %576 = vmatpush.msra.mxu3 %v474_v17 }
  0x8c   :  { %v152_v58 = vand.u32 4294901760, %v151_v54  ;;  %v124_v63 = vsel %vm113_vm5, %v111_v60, 0  ;;  %v160_v1 = vand.u32 4294901760, %v159_v62 }
  0x8d   :  { %v172_v0 = vand.u32 4294901760, %v124_v63  ;;  %578 = vmatpush.msra.mxu3 %v476_v21 }
  0x8e   :  { %153 = vmatmul.f32.vlgmr.msra.gmra.mxu0 %v152_v58  ;;  %212 = vmatmul.f32.gmra.mxu1 %v156_v46 }
  0x8f   :  { %v173_v3 = vsub.f32 %v124_v63, %v172_v0  ;;  %609 = vmatpush.msra.mxu0 %v511_v24 }
  0x90   :  { %251 = vmatmul.f32.gmra.mxu2 %v157_v50 }
  0x91   :  { %v174_v6 = vand.u32 4294901760, %v173_v3  ;;  %613 = vmatpush.msra.mxu0 %v517_v27 }
  0x92   :  { %292 = vmatmul.f32.gmra.mxu3 %v158_v59 }
  0x93   :  { %v175_v7 = vsub.f32 %v173_v3, %v174_v6 }
  0x95   :  { %v176_v8 = vand.u32 4294901760, %v175_v7 }
  0x96   :  { %161 = vmatmul.f32.gmra.mxu0 %v160_v1  ;;  %216 = vmatmul.f32.gmra.mxu1 %v164_v57 }
  0x98   :  { %256 = vmatmul.f32.gmra.mxu2 %v165_v61 }
  0x9a   :  { %298 = vmatmul.f32.gmra.mxu3 %v166_v2 }
  0x9e   :  { %169 = vmatmul.f32.gmra.mxu0 %v168_v5  ;;  %220 = vmatmul.f32.gmra.mxu1 %v172_v0 }
  0xa0   :  { %261 = vmatmul.f32.gmra.mxu2 %v173_v3 }
  0xa2   :  { %304 = vmatmul.f32.gmra.mxu3 %v174_v6 }
  0xa6   :  { %177 = vmatmul.f32.gmra.mxu0 %v176_v8  ;;  %366 = vmatmul.f32.vlgmr.msrb.gmra.mxu1 %v148_v47 }
  0xae   :  { %331 = vmatmul.f32.vlgmr.msrb.gmra.mxu0 %v148_v47  ;;  %370 = vmatmul.f32.gmra.mxu1 %v156_v46 }
  0xb6   :  { %335 = vmatmul.f32.gmra.mxu0 %v156_v46  ;;  %374 = vmatmul.f32.gmra.mxu1 %v164_v57 }
  0xbe   :  { %339 = vmatmul.f32.gmra.mxu0 %v164_v57  ;;  %378 = vmatmul.f32.gmra.mxu1 %v172_v0 }
  0xc6   :  { %343 = vmatmul.f32.gmra.mxu0 %v172_v0 }
 0x103   :  { %v209_v9 = vpop.f32.mrf.mxu1 }
 0x10b   :  { %v154_v10 = vpop.f32.mrf.mxu0  ;;  %v213_v11 = vpop.f32.mrf.mxu1 }
 0x10c   :  { %v155_v22 = vadd.f32 %v2421_v14, %v154_v10  ;;  %v247_v23 = vpop.f32.mrf.mxu2 }
 0x10d   :  { %v287_v29 = vpop.f32.mrf.mxu3 }
 0x10e   :  { %v210_v28 = vadd.f32 %v209_v9, %v155_v22 }
 0x110   :  { %v248_v34 = vadd.f32 %v247_v23, %v210_v28 }
 0x112   :  { %v288_v38 = vadd.f32 %v287_v29, %v248_v34 }
 0x113   :  { %v162_v12 = vpop.f32.mrf.mxu0  ;;  %v217_v13 = vpop.f32.mrf.mxu1 }
 0x114   :  { %v163_v35 = vadd.f32 %v2421_v14, %v162_v12  ;;  %v252_v37 = vpop.f32.mrf.mxu2 }
 0x115   :  { %v293_v42 = vpop.f32.mrf.mxu3 }
 0x116   :  { %v214_v39 = vadd.f32 %v213_v11, %v163_v35 }
 0x118   :  { %v253_v43 = vadd.f32 %v252_v37, %v214_v39 }
 0x11a   :  { %v294_v48 = vadd.f32 %v293_v42, %v253_v43 }
 0x11b   :  { %v170_v16 = vpop.f32.mrf.mxu0  ;;  %v221_v19 = vpop.f32.mrf.mxu1 }
 0x11c   :  { %v171_v44 = vadd.f32 %v2421_v14, %v170_v16  ;;  %v257_v51 = vpop.f32.mrf.mxu2 }
 0x11d   :  { %v299_v59 = vpop.f32.mrf.mxu3 }
 0x11e   :  { %v218_v49 = vadd.f32 %v217_v13, %v171_v44 }
 0x120   :  { %v258_v55 = vadd.f32 %v257_v51, %v218_v49 }
 0x122   :  { %v300_v63 = vadd.f32 %v299_v59, %v258_v55 }
 0x123   :  { %v178_v30 = vpop.f32.mrf.mxu0  ;;  %v367_v36 = vpop.f32.mrf.mxu1 }
 0x124   :  { %v179_v56 = vadd.f32 %v2421_v14, %v178_v30  ;;  %v262_v7 = vpop.f32.mrf.mxu2 }
 0x125   :  { %v305_v16 = vpop.f32.mrf.mxu3 }
 0x126   :  { %v222_v0 = vadd.f32 %v221_v19, %v179_v56 }
 0x128   :  { %v263_v9 = vadd.f32 %v262_v7, %v222_v0 }
 0x12a   :  { %v306_v20 = vadd.f32 %v305_v16, %v263_v9 }
 0x12b   :  { %v332_v40 = vpop.f32.mrf.mxu0  ;;  %v371_v47 = vpop.f32.mrf.mxu1 }
 0x12c   :  { %v333_v41 = vadd.f32 %v332_v40, %v288_v38 }
 0x12e   :  { %v368_v45 = vadd.f32 %v367_v36, %v333_v41 }
 0x130   :  { %v382_v46 = vmax.f32 %v368_v45, 0.0 }
 0x132   :  { %v387_v50 = vrot.slane %v382_v46, 1 }
 0x133   :  { %v336_v52 = vpop.f32.mrf.mxu0  ;;  %v375_v2 = vpop.f32.mrf.mxu1 }
 0x134   :  { %v389_v53 = vmax.f32 %v382_v46, %v387_v50  ;;  %v337_v54 = vadd.f32 %v336_v52, %v294_v48 }
 0x136   :  { %v403_v57 = vrot.slane %v389_v53, 1  ;;  %v372_v58 = vadd.f32 %v371_v47, %v337_v54  ;;  %v405_v60 = vrot.slane %v389_v53, 2  ;;  %v407_v8 = vrot.slane %v389_v53, 3 }
 0x138   :  { %v383_v61 = vmax.f32 %v372_v58, 0.0  ;;  %v434_v62 = vsel %vm47_vm2, %v389_v53, %v403_v57 }
 0x139   :  { %v436_v4 = vsel %vm435_vm6, %v434_v62, %v405_v60 }
 0x13a   :  { %v391_v1 = vrot.slane %v383_v61, 1  ;;  %v438_v12 = vsel %vm437_vm7, %v436_v4, %v407_v8 }
 0x13b   :  { %v340_v3 = vpop.f32.mrf.mxu0  ;;  %v379_v28 = vpop.f32.mrf.mxu1 }
 0x13c   :  { %v393_v5 = vmax.f32 %v383_v61, %v391_v1  ;;  %v341_v6 = vadd.f32 %v340_v3, %v300_v63  ;;  %v2422_v61 = vld [vmem:[#allocation2 + $0x48] ss:$0 sm:$0xff] }
 0x13e   :  { %v410_v10 = vrot.slane %v393_v5, 4  ;;  %v412_v11 = vrot.slane %v393_v5, 5  ;;  %v376_v13 = vadd.f32 %v375_v2, %v341_v6  ;;  %v414_v14 = vrot.slane %v393_v5, 6 }
 0x13f   :  { %v416_v17 = vrot.slane %v393_v5, 7 }
 0x140   :  { %v439_v15 = vsel %vm126_vm1, %v438_v12, %v410_v10  ;;  %v384_v18 = vmax.f32 %v376_v13, 0.0 }
 0x141   :  { %v441_v19 = vsel %vm440_vm8, %v439_v15, %v412_v11 }
 0x142   :  { %v443_v21 = vsel %vm442_vm9, %v441_v19, %v414_v14  ;;  %v395_v22 = vrot.slane %v384_v18, 1 }
 0x143   :  { %v344_v23 = vpop.f32.mrf.mxu0  ;;  %v444_v24 = vsel %vm54_vm0, %v443_v21, %v416_v17 }
 0x144   :  { %v345_v25 = vadd.f32 %v344_v23, %v306_v20  ;;  %v455_v26 = vsel %vm453_vm10, %v444_v24, 0  ;;  %v397_v27 = vmax.f32 %v384_v18, %v395_v22 }
 0x145   :  { %v478_v29 = vand.u32 4294901760, %v455_v26 }
 0x146   :  { %v380_v30 = vadd.f32 %v379_v28, %v345_v25  ;;  %v419_v31 = vrot.slane %v397_v27, 1  ;;  %v421_v33 = vrot.slane %v397_v27, 2  ;;  %v423_v41 = vrot.slane %v397_v27, 3 }
 0x147   :  { %522 = vmatmul.f32.vlgmr.msrb.gmra.mxu3 %v478_v29  ;;  %615 = vmatmul.f32.vlgmr.msra.gmra.mxu0 %v478_v29  ;;  %v479_v32 = vsub.f32 %v455_v26, %v478_v29 }
 0x148   :  { %v385_v34 = vmax.f32 %v380_v30, 0.0  ;;  %642 = vmatmul.f32.vlgmr.msra.gmra.mxu1 %v478_v29  ;;  %v445_v35 = vsel %vm47_vm2, %v397_v27, %v419_v31 }
 0x149   :  { %v480_v36 = vand.u32 4294901760, %v479_v32  ;;  %v446_v39 = vsel %vm435_vm6, %v445_v35, %v421_v33 }
 0x14a   :  { %v399_v37 = vrot.slane %v385_v34, 1  ;;  %v447_v45 = vsel %vm437_vm7, %v446_v39, %v423_v41 }
 0x14b   :  { %v481_v38 = vsub.f32 %v479_v32, %v480_v36 }
 0x14c   :  { %v401_v40 = vmax.f32 %v385_v34, %v399_v37 }
 0x14d   :  { %v482_v42 = vand.u32 4294901760, %v481_v38 }
 0x14e   :  { %v426_v43 = vrot.slane %v401_v40, 4  ;;  %v428_v44 = vrot.slane %v401_v40, 5  ;;  %v430_v46 = vrot.slane %v401_v40, 6  ;;  %v432_v48 = vrot.slane %v401_v40, 7 }
 0x14f   :  { %483 = vmatmul.f32.vlgmr.msrb.gmra.mxu2 %v482_v42 }
 0x150   :  { %v448_v47 = vsel %vm126_vm1, %v447_v45, %v426_v43 }
 0x151   :  { %v449_v49 = vsel %vm440_vm8, %v448_v47, %v428_v44 }
 0x152   :  { %v450_v50 = vsel %vm442_vm9, %v449_v49, %v430_v46 }
 0x153   :  { %v451_v51 = vsel %vm54_vm0, %v450_v50, %v432_v48 }
 0x154   :  { %v458_v52 = vsel %vm453_vm10, %v451_v51, 0 }
 0x155   :  { %v486_v53 = vand.u32 4294901760, %v458_v52 }
 0x157   :  { %526 = vmatmul.f32.gmra.mxu3 %v486_v53  ;;  %619 = vmatmul.f32.gmra.mxu0 %v486_v53  ;;  %v487_v54 = vsub.f32 %v458_v52, %v486_v53  ;;  %v36_v52 = vld [vmem:[#allocation2 + $0x40] sm:$0xff] }
 0x158   :  { %646 = vmatmul.f32.gmra.mxu1 %v486_v53  ;;  %v35_v53 = vld [vmem:[#allocation2 + $0x38] sm:$0xff] }
 0x159   :  { %v488_v55 = vand.u32 4294901760, %v487_v54 }
 0x15b   :  { %v489_v56 = vsub.f32 %v487_v54, %v488_v55 }
 0x15d   :  { %v490_v57 = vand.u32 4294901760, %v489_v56 }
 0x15f   :  { %491 = vmatmul.f32.gmra.mxu2 %v490_v57  ;;  %582 = vmatmul.f32.vlgmr.msra.gmra.mxu3 %v480_v36 }
 0x167   :  { %552 = vmatmul.f32.vlgmr.msra.gmra.mxu2 %v479_v32  ;;  %588 = vmatmul.f32.gmra.mxu3 %v488_v55  ;;  %v2628_v55 = vand.u32 4294901760, %v35_v53 }
 0x169   :  { %v2636_v57 = vsub.f32 %v35_v53, %v2628_v55 }
 0x16f   :  { %557 = vmatmul.f32.gmra.mxu2 %v487_v54  ;;  %v2626_v54 = vand.u32 4294901760, %v36_v52 }
 0x171   :  { %729 = vmatpush.msrb.mxu2 %v2626_v54  ;;  %v2632_v56 = vsub.f32 %v36_v52, %v2626_v54  ;;  %889 = vmatpush.msrb.mxu1 %v2626_v54 }
 0x173   :  { %891 = vmatpush.msrb.mxu1 %v2628_v55  ;;  %731 = vmatpush.msrb.mxu2 %v2628_v55 }
 0x1c4   :  { %v616_v6 = vpop.f32.mrf.mxu0 }
 0x1c5   :  { %v643_v7 = vpop.f32.mrf.mxu1 }
 0x1ca   :  { %v523_v58 = vpop.f32.mrf.mxu3 }
 0x1d2   :  { %v484_v59 = vpop.f32.mrf.mxu2 }
 0x1d3   :  { %v485_v63 = vadd.f32 %v2422_v61, %v484_v59  ;;  %v2642_v59 = vand.u32 4294901760, %v2636_v57 }
 0x1d4   :  { %v620_v15 = vpop.f32.mrf.mxu0 }
 0x1d5   :  { %v524_v0 = vadd.f32 %v523_v58, %v485_v63  ;;  %v647_v17 = vpop.f32.mrf.mxu1  ;;  %v2639_v58 = vand.u32 4294901760, %v2632_v56 }
 0x1d7   :  { %858 = vmatpush.msrb.mxu0 %v2639_v58 }
 0x1d9   :  { %862 = vmatpush.msrb.mxu0 %v2642_v59 }
 0x1da   :  { %v527_v60 = vpop.f32.mrf.mxu3 }
 0x1e2   :  { %v492_v62 = vpop.f32.mrf.mxu2  ;;  %v583_v1 = vpop.f32.mrf.mxu3 }
 0x1e3   :  { %v493_v4 = vadd.f32 %v2422_v61, %v492_v62  ;;  %v766_v61 = vsub.f32 %v2636_v57, %v2642_v59 }
 0x1e5   :  { %v528_v9 = vadd.f32 %v527_v60, %v493_v4  ;;  %v760_v60 = vsub.f32 %v2632_v56, %v2639_v58  ;;  %v2653_v63 = vand.u32 4294901760, %v766_v61  ;;  %v33_v4 = vld [vmem:[#allocation2 + $0x28] sm:$0xff] }
 0x1e7   :  { %v2651_v62 = vand.u32 4294901760, %v760_v60 }
 0x1e9   :  { %762 = vmatpush.msrb.mxu3 %v2651_v62 }
 0x1ea   :  { %v553_v2 = vpop.f32.mrf.mxu2  ;;  %v589_v12 = vpop.f32.mrf.mxu3 }
 0x1eb   :  { %v554_v3 = vadd.f32 %v553_v2, %v524_v0  ;;  %768 = vmatpush.msrb.mxu3 %v2653_v63  ;;  %v34_v2 = vld [vmem:[#allocation2 + $0x30] sm:$0xff] }
 0x1ed   :  { %v584_v5 = vadd.f32 %v583_v1, %v554_v3  ;;  %v2659_v3 = vand.u32 4294901760, %v34_v2 }
 0x1ef   :  { %v617_v8 = vadd.f32 %v616_v6, %v584_v5  ;;  %v2662_v5 = vsub.f32 %v34_v2, %v2659_v3  ;;  %893 = vmatpush.msrb.mxu1 %v2659_v3  ;;  %v2665_v6 = vand.u32 4294901760, %v33_v4  ;;  %733 = vmatpush.msrb.mxu2 %v2659_v3 }
 0x1f1   :  { %v644_v13 = vadd.f32 %v643_v7, %v617_v8  ;;  %v2669_v7 = vand.u32 4294901760, %v2662_v5  ;;  %v2672_v8 = vsub.f32 %v33_v4, %v2665_v6  ;;  %895 = vmatpush.msrb.mxu1 %v2665_v6  ;;  %735 = vmatpush.msrb.mxu2 %v2665_v6 }
 0x1f2   :  { %v558_v10 = vpop.f32.mrf.mxu2 }
 0x1f3   :  { %v559_v11 = vadd.f32 %v558_v10, %v528_v9  ;;  %v655_v19 = vrot.slane %v644_v13, 1  ;;  %v658_v20 = vrot.slane %v644_v13, 2  ;;  %v663_v21 = vrot.slane %v644_v13, 3  ;;  %800 = vmatpush.msra.mxu2 %v2632_v56  ;;  %1042 = vmatpush.msra.mxu1 %v2626_v54 }
 0x1f4   :  { %v668_v22 = vrot.slane %v644_v13, 4  ;;  %v673_v23 = vrot.slane %v644_v13, 5  ;;  %v678_v24 = vrot.slane %v644_v13, 6  ;;  %v683_v36 = vrot.slane %v644_v13, 7  ;;  %866 = vmatpush.msrb.mxu0 %v2669_v7 }
 0x1f5   :  { %v590_v14 = vadd.f32 %v589_v12, %v559_v11  ;;  %v772_v9 = vsub.f32 %v2662_v5, %v2669_v7  ;;  %v2682_v10 = vand.u32 4294901760, %v2672_v8  ;;  %803 = vmatpush.msra.mxu2 %v2636_v57  ;;  %1044 = vmatpush.msra.mxu1 %v2628_v55 }
 0x1f7   :  { %v621_v16 = vadd.f32 %v620_v15, %v590_v14  ;;  %v2686_v11 = vand.u32 4294901760, %v772_v9  ;;  %v778_v12 = vsub.f32 %v2672_v8, %v2682_v10  ;;  %870 = vmatpush.msrb.mxu0 %v2682_v10  ;;  %806 = vmatpush.msra.mxu2 %v2662_v5 }
 0x1f8   :  { %1046 = vmatpush.msra.mxu1 %v2659_v3 }
 0x1f9   :  { %v648_v18 = vadd.f32 %v647_v17, %v621_v16  ;;  %1013 = vmatpush.msra.mxu0 %v2632_v56  ;;  %774 = vmatpush.msrb.mxu3 %v2686_v11 }
 0x1fa   :  { %809 = vmatpush.msra.mxu2 %v2672_v8  ;;  %1048 = vmatpush.msra.mxu1 %v2665_v6 }
 0x1fb   :  { %v651_v25 = vrot.slane %v648_v18, 7  ;;  %v2599_v26 = vsel %vm47_vm2, %v655_v19, %v648_v18  ;;  %v660_v27 = vrot.slane %v648_v18, 1  ;;  %v665_v28 = vrot.slane %v648_v18, 2  ;;  %1016 = vmatpush.msra.mxu0 %v2636_v57 }
 0x1fc   :  { %v670_v29 = vrot.slane %v648_v18, 3  ;;  %v675_v30 = vrot.slane %v648_v18, 4  ;;  %v680_v31 = vrot.slane %v648_v18, 5  ;;  %v685_v32 = vrot.slane %v648_v18, 6 }
 0x1fd   :  { %v653_v33 = vsel %vm47_vm2, %v644_v13, %v651_v25  ;;  %v2603_v34 = vsel %vm47_vm2, %v658_v20, %v660_v27  ;;  %v2606_v35 = vsel %vm47_vm2, %v663_v21, %v665_v28  ;;  %v2694_v13 = vand.u32 4294901760, %v778_v12  ;;  %1019 = vmatpush.msra.mxu0 %v2662_v5 }
 0x1fe   :  { %2424 = vtanh.f32 %v653_v33  ;;  %v2609_v37 = vsel %vm47_vm2, %v668_v22, %v670_v29  ;;  %v2612_v38 = vsel %vm47_vm2, %v673_v23, %v675_v30  ;;  %v2615_v39 = vsel %vm47_vm2, %v678_v24, %v680_v31 }
 0x1ff   :  { %v2618_v40 = vsel %vm47_vm2, %v683_v36, %v685_v32  ;;  %v688_v42 = vmul.f32 0.5, %v653_v33  ;;  %780 = vmatpush.msrb.mxu3 %v2694_v13  ;;  %1022 = vmatpush.msra.mxu0 %v2672_v8 }
 0x201   :  { %2426 = vtanh.f32 %v688_v42  ;;  %829 = vmatpush.msra.mxu3 %v2626_v54 }
 0x203   :  { %831 = vmatpush.msra.mxu3 %v2628_v55 }
 0x204   :  { %v2425_v41 = vpop.eup %2424 }
 0x205   :  { %695 = vrot.lane.b32.xlu2 %v2425_v41, %s2528_s0  ;;  %833 = vmatpush.msra.mxu3 %v2659_v3 }
 0x207   :  { %v2427_v43 = vpop.eup %2426  ;;  %835 = vmatpush.msra.mxu3 %v2665_v6 }
 0x208   :  { %v690_v44 = vmul.f32 0.5, %v2427_v43 }
 0x20a   :  { %v691_v45 = vadd.f32 0.5, %v690_v44 }
 0x20c   :  { %v693_v48 = vmul.f32 0.0, %v691_v45 }
 0x25f   :  { %v696_v46 = vpop.permute.xlu2 %695 }
 0x260   :  { %v698_v47 = vmul.f32 %v696_v46, %v691_v45 }
 0x262   :  { %700 = vrot.lane.b32.xlu0 %v698_v47, %s2529_s24 }
 0x2d4   :  { %v701_v49 = vpop.permute.xlu0 %700 }
 0x2d5   :  { %v2622_v50 = vadd.f32 %v701_v49, %v693_v48 }
 0x2d7   :  { %2428 = vtanh.f32 %v2622_v50 }
 0x2dd   :  { %v2429_v51 = vpop.eup %2428 }
 0x2de   :  { %706 = vrot.lane.b32.xlu1 %v2429_v51, %s2528_s0 }
 0x350   :  { %v707_v0 = vpop.permute.xlu1 %706 }
 0x351   :  { %v709_v1 = vmul.f32 %v707_v0, %v691_v45 }
 0x353   :  { %711 = vrot.lane.b32.xlu2 %v709_v1, %s2529_s24 }
 0x3ad   :  { %v712_v14 = vpop.permute.xlu2 %711 }
 0x3ae   :  { %v714_v15 = vsel %vm713_vm11, %v712_v14, 0 }
 0x3af   :  { %v736_v16 = vand.u32 4294901760, %v714_v15 }
 0x3b1   :  { %v737_v17 = vsub.f32 %v714_v15, %v736_v16  ;;  %782 = vmatmul.f32.vlgmr.msrb.gmra.mxu3 %v736_v16  ;;  %872 = vmatmul.f32.vlgmr.msrb.gmra.mxu0 %v736_v16 }
 0x3b2   :  { %897 = vmatmul.f32.vlgmr.msrb.gmra.mxu1 %v736_v16  ;;  %975 = vmatpush.msrb.mxu3 %v2651_v62 }
 0x3b3   :  { %v738_v18 = vand.u32 4294901760, %v737_v17  ;;  %1188 = vmatpush.msrb.mxu1 %v2651_v62  ;;  %1155 = vmatpush.msrb.mxu0 %v2626_v54 }
 0x3b4   :  { %981 = vmatpush.msrb.mxu3 %v2653_v63 }
 0x3b5   :  { %v739_v19 = vsub.f32 %v737_v17, %v738_v18  ;;  %1194 = vmatpush.msrb.mxu1 %v2653_v63  ;;  %1157 = vmatpush.msrb.mxu0 %v2628_v55 }
 0x3b6   :  { %987 = vmatpush.msrb.mxu3 %v2686_v11 }
 0x3b7   :  { %v740_v20 = vand.u32 4294901760, %v739_v19  ;;  %1200 = vmatpush.msrb.mxu1 %v2686_v11  ;;  %1159 = vmatpush.msrb.mxu0 %v2659_v3 }
 0x3b8   :  { %993 = vmatpush.msrb.mxu3 %v2694_v13 }
 0x3b9   :  { %741 = vmatmul.f32.vlgmr.msrb.gmra.mxu2 %v740_v20  ;;  %839 = vmatmul.f32.vlgmr.msra.gmra.mxu3 %v738_v18 }
 0x3ba   :  { %942 = vmatpush.msrb.mxu2 %v2626_v54  ;;  %1102 = vmatpush.msra.mxu3 %v2626_v54 }
 0x3bb   :  { %1206 = vmatpush.msrb.mxu1 %v2694_v13  ;;  %1161 = vmatpush.msrb.mxu0 %v2665_v6 }
 0x3bc   :  { %944 = vmatpush.msrb.mxu2 %v2628_v55  ;;  %1104 = vmatpush.msra.mxu3 %v2628_v55 }
 0x3be   :  { %946 = vmatpush.msrb.mxu2 %v2659_v3  ;;  %1106 = vmatpush.msra.mxu3 %v2659_v3 }
 0x3c0   :  { %948 = vmatpush.msrb.mxu2 %v2665_v6  ;;  %1108 = vmatpush.msra.mxu3 %v2665_v6 }
 0x3c1   :  { %812 = vmatmul.f32.vlgmr.msra.gmra.mxu2 %v737_v17 }
 0x3c2   :  { %1071 = vmatpush.msra.mxu2 %v2639_v58 }
 0x3c4   :  { %1075 = vmatpush.msra.mxu2 %v2642_v59 }
 0x3c6   :  { %1079 = vmatpush.msra.mxu2 %v2669_v7 }
 0x3c8   :  { %1083 = vmatpush.msra.mxu2 %v2682_v10 }
 0x42e   :  { %v873_v29 = vpop.f32.mrf.mxu0 }
 0x42f   :  { %v898_v31 = vpop.f32.mrf.mxu1 }
 0x434   :  { %v783_v21 = vpop.f32.mrf.mxu3 }
 0x43c   :  { %v742_v22 = vpop.f32.mrf.mxu2  ;;  %v840_v27 = vpop.f32.mrf.mxu3 }
 0x43d   :  { %v784_v23 = vadd.f32 %v783_v21, %v742_v22 }
 0x444   :  { %v813_v24 = vpop.f32.mrf.mxu2 }
 0x445   :  { %v814_v25 = vadd.f32 %v813_v24, %v784_v23 }
 0x447   :  { %v841_v28 = vadd.f32 %v840_v27, %v814_v25 }
 0x449   :  { %v874_v30 = vadd.f32 %v873_v29, %v841_v28 }
 0x44b   :  { %v899_v32 = vadd.f32 %v898_v31, %v874_v30 }
 0x44d   :  { %v901_v33 = vadd.f32 %v899_v32, %v2599_v26 }
 0x44f   :  { %2430 = vtanh.f32 %v901_v33  ;;  %v902_v41 = vmul.f32 0.5, %v901_v33 }
 0x451   :  { %2432 = vtanh.f32 %v902_v41 }
 0x455   :  { %v2431_v36 = vpop.eup %2430 }
 0x456   :  { %909 = vrot.lane.b32.xlu0 %v2431_v36, %s2528_s0 }
 0x457   :  { %v2433_v42 = vpop.eup %2432 }
 0x458   :  { %v904_v43 = vmul.f32 0.5, %v2433_v42 }
 0x45a   :  { %v905_v44 = vadd.f32 0.5, %v904_v43 }
 0x45c   :  { %v907_v47 = vmul.f32 %v905_v44, %v2622_v50 }
 0x4c8   :  { %v910_v45 = vpop.permute.xlu0 %909 }
 0x4c9   :  { %v912_v46 = vmul.f32 %v910_v45, %v905_v44 }
 0x4cb   :  { %914 = vrot.lane.b32.xlu1 %v912_v46, %s2529_s24 }
 0x53d   :  { %v915_v48 = vpop.permute.xlu1 %914 }
 0x53e   :  { %v2736_v49 = vadd.f32 %v915_v48, %v907_v47 }
 0x540   :  { %2434 = vtanh.f32 %v2736_v49 }
 0x546   :  { %v2435_v26 = vpop.eup %2434 }
 0x547   :  { %920 = vrot.lane.b32.xlu2 %v2435_v26, %s2528_s0 }
 0x5a1   :  { %v921_v51 = vpop.permute.xlu2 %920 }
 0x5a2   :  { %v923_v52 = vmul.f32 %v921_v51, %v905_v44 }
 0x5a4   :  { %925 = vrot.lane.b32.xlu0 %v923_v52, %s2529_s24 }
 0x616   :  { %v926_v53 = vpop.permute.xlu0 %925 }
 0x617   :  { %v927_v60 = vsel %vm713_vm11, %v926_v53, 0 }
 0x618   :  { %v949_v61 = vand.u32 4294901760, %v927_v60 }
 0x61a   :  { %v950_v0 = vsub.f32 %v927_v60, %v949_v61  ;;  %995 = vmatmul.f32.vlgmr.msrb.gmra.mxu3 %v949_v61 }
 0x61b   :  { %1255 = vmatpush.msrb.mxu3 %v2626_v54 }
 0x61c   :  { %v951_v50 = vand.u32 4294901760, %v950_v0  ;;  %1025 = vmatmul.f32.vlgmr.msra.gmra.mxu0 %v950_v0 }
 0x61d   :  { %1257 = vmatpush.msrb.mxu3 %v2628_v55  ;;  %1284 = vmatpush.msra.mxu0 %v2639_v58 }
 0x61e   :  { %v952_v1 = vsub.f32 %v950_v0, %v951_v50  ;;  %1052 = vmatmul.f32.vlgmr.msra.gmra.mxu1 %v951_v50 }
 0x61f   :  { %1259 = vmatpush.msrb.mxu3 %v2659_v3  ;;  %1315 = vmatpush.msra.mxu1 %v2626_v54 }
 0x620   :  { %v953_v2 = vand.u32 4294901760, %v952_v1  ;;  %1288 = vmatpush.msra.mxu0 %v2642_v59 }
 0x621   :  { %1261 = vmatpush.msrb.mxu3 %v2665_v6  ;;  %1317 = vmatpush.msra.mxu1 %v2628_v55 }
 0x622   :  { %954 = vmatmul.f32.vlgmr.msrb.gmra.mxu2 %v953_v2  ;;  %1110 = vmatmul.f32.vlgmr.msra.gmra.mxu3 %v949_v61 }
 0x623   :  { %1226 = vmatpush.msrb.mxu2 %v2632_v56  ;;  %1319 = vmatpush.msra.mxu1 %v2659_v3 }
 0x624   :  { %1292 = vmatpush.msra.mxu0 %v2669_v7  ;;  %1401 = vmatpush.msra.mxu3 %v2651_v62 }
 0x625   :  { %1229 = vmatpush.msrb.mxu2 %v2636_v57  ;;  %1321 = vmatpush.msra.mxu1 %v2665_v6 }
 0x626   :  { %1296 = vmatpush.msra.mxu0 %v2682_v10  ;;  %1407 = vmatpush.msra.mxu3 %v2653_v63 }
 0x627   :  { %1232 = vmatpush.msrb.mxu2 %v2662_v5 }
 0x628   :  { %1413 = vmatpush.msra.mxu3 %v2686_v11 }
 0x629   :  { %1235 = vmatpush.msrb.mxu2 %v2672_v8 }
 0x62a   :  { %1085 = vmatmul.f32.vlgmr.msra.gmra.mxu2 %v949_v61  ;;  %1419 = vmatpush.msra.mxu3 %v2694_v13 }
 0x62b   :  { %1368 = vmatpush.msra.mxu2 %v2626_v54 }
 0x62d   :  { %1370 = vmatpush.msra.mxu2 %v2628_v55 }
 0x62f   :  { %1372 = vmatpush.msra.mxu2 %v2659_v3 }
 0x631   :  { %1374 = vmatpush.msra.mxu2 %v2665_v6 }
 0x699   :  { %v1026_v14 = vpop.f32.mrf.mxu0 }
 0x69b   :  { %v1053_v16 = vpop.f32.mrf.mxu1 }
 0x69d   :  { %v996_v4 = vpop.f32.mrf.mxu3 }
 0x6a5   :  { %v955_v9 = vpop.f32.mrf.mxu2  ;;  %v1111_v20 = vpop.f32.mrf.mxu3 }
 0x6a6   :  { %v997_v12 = vadd.f32 %v996_v4, %v955_v9 }
 0x6a8   :  { %v1027_v15 = vadd.f32 %v1026_v14, %v997_v12 }
 0x6aa   :  { %v1054_v17 = vadd.f32 %v1053_v16, %v1027_v15 }
 0x6ad   :  { %v1086_v18 = vpop.f32.mrf.mxu2 }
 0x6ae   :  { %v1087_v19 = vadd.f32 %v1086_v18, %v1054_v17 }
 0x6b0   :  { %v1112_v21 = vadd.f32 %v1111_v20, %v1087_v19 }
 0x6b2   :  { %v1114_v22 = vadd.f32 %v1112_v21, %v2603_v34 }
 0x6b4   :  { %2436 = vtanh.f32 %v1114_v22  ;;  %v1115_v24 = vmul.f32 0.5, %v1114_v22 }
 0x6b6   :  { %2438 = vtanh.f32 %v1115_v24 }
 0x6ba   :  { %v2437_v23 = vpop.eup %2436 }
 0x6bb   :  { %1122 = vrot.lane.b32.xlu1 %v2437_v23, %s2528_s0 }
 0x6bc   :  { %v2439_v25 = vpop.eup %2438 }
 0x6bd   :  { %v1117_v27 = vmul.f32 0.5, %v2439_v25 }
 0x6bf   :  { %v1118_v28 = vadd.f32 0.5, %v1117_v27 }
 0x6c1   :  { %v1120_v31 = vmul.f32 %v1118_v28, %v2736_v49 }
 0x72d   :  { %v1123_v29 = vpop.permute.xlu1 %1122 }
 0x72e   :  { %v1125_v30 = vmul.f32 %v1123_v29, %v1118_v28 }
 0x730   :  { %1127 = vrot.lane.b32.xlu2 %v1125_v30, %s2529_s24 }
 0x78a   :  { %v1128_v32 = vpop.permute.xlu2 %1127 }
 0x78b   :  { %v2770_v33 = vadd.f32 %v1128_v32, %v1120_v31 }
 0x78d   :  { %2440 = vtanh.f32 %v2770_v33 }
 0x793   :  { %v2441_v34 = vpop.eup %2440 }
 0x794   :  { %1133 = vrot.lane.b32.xlu0 %v2441_v34, %s2528_s0 }
 0x806   :  { %v1134_v36 = vpop.permute.xlu0 %1133 }
 0x807   :  { %v1136_v41 = vmul.f32 %v1134_v36, %v1118_v28 }
 0x809   :  { %1138 = vrot.lane.b32.xlu1 %v1136_v41, %s2529_s24 }
 0x87b   :  { %v1139_v42 = vpop.permute.xlu1 %1138 }
 0x87c   :  { %v1140_v43 = vsel %vm713_vm11, %v1139_v42, 0 }
 0x87d   :  { %v1162_v44 = vand.u32 4294901760, %v1140_v43 }
 0x87f   :  { %v1163_v45 = vsub.f32 %v1140_v43, %v1162_v44  ;;  %1208 = vmatmul.f32.vlgmr.msrb.gmra.mxu1 %v1162_v44 }
 0x880   :  { %1468 = vmatpush.msrb.mxu1 %v2626_v54 }
 0x881   :  { %v1164_v46 = vand.u32 4294901760, %v1163_v45  ;;  %1238 = vmatmul.f32.vlgmr.msrb.gmra.mxu2 %v1163_v45 }
 0x882   :  { %1470 = vmatpush.msrb.mxu1 %v2628_v55  ;;  %1497 = vmatpush.msrb.mxu2 %v2639_v58 }
 0x883   :  { %v1165_v47 = vsub.f32 %v1163_v45, %v1164_v46  ;;  %1265 = vmatmul.f32.vlgmr.msrb.gmra.mxu3 %v1164_v46 }
 0x884   :  { %1472 = vmatpush.msrb.mxu1 %v2659_v3  ;;  %1528 = vmatpush.msrb.mxu3 %v2626_v54 }
 0x885   :  { %v1166_v48 = vand.u32 4294901760, %v1165_v47  ;;  %1501 = vmatpush.msrb.mxu2 %v2642_v59 }
 0x886   :  { %1474 = vmatpush.msrb.mxu1 %v2665_v6  ;;  %1530 = vmatpush.msrb.mxu3 %v2628_v55 }
 0x887   :  { %1167 = vmatmul.f32.vlgmr.msrb.gmra.mxu0 %v1166_v48  ;;  %1323 = vmatmul.f32.vlgmr.msra.gmra.mxu1 %v1162_v44 }
 0x888   :  { %1439 = vmatpush.msrb.mxu0 %v2632_v56  ;;  %1532 = vmatpush.msrb.mxu3 %v2659_v3 }
 0x889   :  { %1505 = vmatpush.msrb.mxu2 %v2669_v7  ;;  %1614 = vmatpush.msra.mxu1 %v2651_v62 }
 0x88a   :  { %1442 = vmatpush.msrb.mxu0 %v2636_v57  ;;  %1534 = vmatpush.msrb.mxu3 %v2665_v6 }
 0x88b   :  { %1509 = vmatpush.msrb.mxu2 %v2682_v10  ;;  %1620 = vmatpush.msra.mxu1 %v2653_v63 }
 0x88c   :  { %1445 = vmatpush.msrb.mxu0 %v2662_v5 }
 0x88d   :  { %1626 = vmatpush.msra.mxu1 %v2686_v11 }
 0x88e   :  { %1448 = vmatpush.msrb.mxu0 %v2672_v8 }
 0x88f   :  { %1298 = vmatmul.f32.vlgmr.msra.gmra.mxu0 %v1162_v44  ;;  %1632 = vmatpush.msra.mxu1 %v2694_v13 }
 0x890   :  { %1581 = vmatpush.msra.mxu0 %v2626_v54 }
 0x892   :  { %1583 = vmatpush.msra.mxu0 %v2628_v55 }
 0x894   :  { %1585 = vmatpush.msra.mxu0 %v2659_v3 }
 0x896   :  { %1587 = vmatpush.msra.mxu0 %v2665_v6 }
 0x8fc   :  { %v1209_v49 = vpop.f32.mrf.mxu1 }
 0x904   :  { %v1168_v26 = vpop.f32.mrf.mxu0  ;;  %v1239_v52 = vpop.f32.mrf.mxu2 }
 0x905   :  { %v1210_v51 = vadd.f32 %v1209_v49, %v1168_v26  ;;  %v1324_v1 = vpop.f32.mrf.mxu1 }
 0x906   :  { %v1266_v60 = vpop.f32.mrf.mxu3 }
 0x907   :  { %v1240_v53 = vadd.f32 %v1239_v52, %v1210_v51 }
 0x909   :  { %v1267_v61 = vadd.f32 %v1266_v60, %v1240_v53 }
 0x90c   :  { %v1299_v0 = vpop.f32.mrf.mxu0 }
 0x90d   :  { %v1300_v50 = vadd.f32 %v1299_v0, %v1267_v61 }
 0x90f   :  { %v1325_v2 = vadd.f32 %v1324_v1, %v1300_v50 }
 0x911   :  { %v1327_v4 = vadd.f32 %v1325_v2, %v2606_v35 }
 0x913   :  { %2442 = vtanh.f32 %v1327_v4  ;;  %v1328_v12 = vmul.f32 0.5, %v1327_v4 }
 0x915   :  { %2444 = vtanh.f32 %v1328_v12 }
 0x919   :  { %v2443_v9 = vpop.eup %2442 }
 0x91a   :  { %1335 = vrot.lane.b32.xlu2 %v2443_v9, %s2528_s0 }
 0x91b   :  { %v2445_v14 = vpop.eup %2444 }
 0x91c   :  { %v1330_v15 = vmul.f32 0.5, %v2445_v14 }
 0x91e   :  { %v1331_v16 = vadd.f32 0.5, %v1330_v15 }
 0x920   :  { %v1333_v19 = vmul.f32 %v1331_v16, %v2770_v33 }
 0x974   :  { %v1336_v17 = vpop.permute.xlu2 %1335 }
 0x975   :  { %v1338_v18 = vmul.f32 %v1336_v17, %v1331_v16 }
 0x977   :  { %1340 = vrot.lane.b32.xlu0 %v1338_v18, %s2529_s24 }
 0x9e9   :  { %v1341_v20 = vpop.permute.xlu0 %1340 }
 0x9ea   :  { %v2804_v21 = vadd.f32 %v1341_v20, %v1333_v19 }
 0x9ec   :  { %2446 = vtanh.f32 %v2804_v21 }
 0x9f2   :  { %v2447_v35 = vpop.eup %2446 }
 0x9f3   :  { %1346 = vrot.lane.b32.xlu1 %v2447_v35, %s2528_s0 }
 0xa65   :  { %v1347_v22 = vpop.permute.xlu1 %1346 }
 0xa66   :  { %v1349_v23 = vmul.f32 %v1347_v22, %v1331_v16 }
 0xa68   :  { %1351 = vrot.lane.b32.xlu2 %v1349_v23, %s2529_s24 }
 0xac2   :  { %v1352_v24 = vpop.permute.xlu2 %1351 }
 0xac3   :  { %v1353_v25 = vsel %vm713_vm11, %v1352_v24, 0 }
 0xac4   :  { %v1375_v27 = vand.u32 4294901760, %v1353_v25 }
 0xac6   :  { %v1376_v28 = vsub.f32 %v1353_v25, %v1375_v27  ;;  %1421 = vmatmul.f32.vlgmr.msra.gmra.mxu3 %v1375_v27 }
 0xac7   :  { %1681 = vmatpush.msra.mxu3 %v2626_v54 }
 0xac8   :  { %v1377_v29 = vand.u32 4294901760, %v1376_v28  ;;  %1451 = vmatmul.f32.vlgmr.msrb.gmra.mxu0 %v1376_v28 }
 0xac9   :  { %1683 = vmatpush.msra.mxu3 %v2628_v55  ;;  %1710 = vmatpush.msrb.mxu0 %v2639_v58 }
 0xaca   :  { %v1378_v30 = vsub.f32 %v1376_v28, %v1377_v29  ;;  %1478 = vmatmul.f32.vlgmr.msrb.gmra.mxu1 %v1377_v29 }
 0xacb   :  { %1685 = vmatpush.msra.mxu3 %v2659_v3  ;;  %1741 = vmatpush.msrb.mxu1 %v2626_v54 }
 0xacc   :  { %v1379_v31 = vand.u32 4294901760, %v1378_v30  ;;  %1714 = vmatpush.msrb.mxu0 %v2642_v59 }
 0xacd   :  { %1687 = vmatpush.msra.mxu3 %v2665_v6  ;;  %1743 = vmatpush.msrb.mxu1 %v2628_v55 }
 0xace   :  { %1380 = vmatmul.f32.vlgmr.msra.gmra.mxu2 %v1379_v31  ;;  %1536 = vmatmul.f32.vlgmr.msrb.gmra.mxu3 %v1375_v27 }
 0xacf   :  { %1652 = vmatpush.msra.mxu2 %v2632_v56  ;;  %1745 = vmatpush.msrb.mxu1 %v2659_v3 }
 0xad0   :  { %1718 = vmatpush.msrb.mxu0 %v2669_v7  ;;  %1827 = vmatpush.msrb.mxu3 %v2651_v62 }
 0xad1   :  { %1655 = vmatpush.msra.mxu2 %v2636_v57  ;;  %1747 = vmatpush.msrb.mxu1 %v2665_v6 }
 0xad2   :  { %1722 = vmatpush.msrb.mxu0 %v2682_v10  ;;  %1833 = vmatpush.msrb.mxu3 %v2653_v63 }
 0xad3   :  { %1658 = vmatpush.msra.mxu2 %v2662_v5 }
 0xad4   :  { %1839 = vmatpush.msrb.mxu3 %v2686_v11 }
 0xad5   :  { %1661 = vmatpush.msra.mxu2 %v2672_v8 }
 0xad6   :  { %1511 = vmatmul.f32.vlgmr.msrb.gmra.mxu2 %v1375_v27  ;;  %1845 = vmatpush.msrb.mxu3 %v2694_v13 }
 0xad7   :  { %1794 = vmatpush.msrb.mxu2 %v2626_v54 }
 0xad9   :  { %1796 = vmatpush.msrb.mxu2 %v2628_v55 }
 0xadb   :  { %1798 = vmatpush.msrb.mxu2 %v2659_v3 }
 0xadd   :  { %1800 = vmatpush.msrb.mxu2 %v2665_v6 }
 0xb45   :  { %v1452_v36 = vpop.f32.mrf.mxu0 }
 0xb47   :  { %v1479_v42 = vpop.f32.mrf.mxu1 }
 0xb49   :  { %v1422_v32 = vpop.f32.mrf.mxu3 }
 0xb51   :  { %v1381_v33 = vpop.f32.mrf.mxu2  ;;  %v1537_v46 = vpop.f32.mrf.mxu3 }
 0xb52   :  { %v1423_v34 = vadd.f32 %v1422_v32, %v1381_v33 }
 0xb54   :  { %v1453_v41 = vadd.f32 %v1452_v36, %v1423_v34 }
 0xb56   :  { %v1480_v43 = vadd.f32 %v1479_v42, %v1453_v41 }
 0xb59   :  { %v1512_v44 = vpop.f32.mrf.mxu2 }
 0xb5a   :  { %v1513_v45 = vadd.f32 %v1512_v44, %v1480_v43 }
 0xb5c   :  { %v1538_v47 = vadd.f32 %v1537_v46, %v1513_v45 }
 0xb5e   :  { %v1540_v48 = vadd.f32 %v1538_v47, %v2609_v37 }
 0xb60   :  { %2448 = vtanh.f32 %v1540_v48  ;;  %v1541_v26 = vmul.f32 0.5, %v1540_v48 }
 0xb62   :  { %2450 = vtanh.f32 %v1541_v26 }
 0xb66   :  { %v2449_v49 = vpop.eup %2448 }
 0xb67   :  { %1548 = vrot.lane.b32.xlu0 %v2449_v49, %s2528_s0 }
 0xb68   :  { %v2451_v51 = vpop.eup %2450 }
 0xb69   :  { %v1543_v52 = vmul.f32 0.5, %v2451_v51 }
 0xb6b   :  { %v1544_v53 = vadd.f32 0.5, %v1543_v52 }
 0xb6d   :  { %v1546_v0 = vmul.f32 %v1544_v53, %v2804_v21 }
 0xbd9   :  { %v1549_v60 = vpop.permute.xlu0 %1548 }
 0xbda   :  { %v1551_v61 = vmul.f32 %v1549_v60, %v1544_v53 }
 0xbdc   :  { %1553 = vrot.lane.b32.xlu1 %v1551_v61, %s2529_s24 }
 0xc4e   :  { %v1554_v50 = vpop.permute.xlu1 %1553 }
 0xc4f   :  { %v2838_v1 = vadd.f32 %v1554_v50, %v1546_v0 }
 0xc51   :  { %2452 = vtanh.f32 %v2838_v1 }
 0xc57   :  { %v2453_v37 = vpop.eup %2452 }
 0xc58   :  { %1559 = vrot.lane.b32.xlu2 %v2453_v37, %s2528_s0 }
 0xcb2   :  { %v1560_v2 = vpop.permute.xlu2 %1559 }
 0xcb3   :  { %v1562_v4 = vmul.f32 %v1560_v2, %v1544_v53 }
 0xcb5   :  { %1564 = vrot.lane.b32.xlu0 %v1562_v4, %s2529_s24 }
 0xd27   :  { %v1565_v9 = vpop.permute.xlu0 %1564 }
 0xd28   :  { %v1566_v12 = vsel %vm713_vm11, %v1565_v9, 0 }
 0xd29   :  { %v1588_v14 = vand.u32 4294901760, %v1566_v12 }
 0xd2b   :  { %v1589_v15 = vsub.f32 %v1566_v12, %v1588_v14  ;;  %1634 = vmatmul.f32.vlgmr.msra.gmra.mxu1 %v1588_v14 }
 0xd2c   :  { %1894 = vmatpush.msra.mxu1 %v2626_v54 }
 0xd2d   :  { %v1590_v16 = vand.u32 4294901760, %v1589_v15  ;;  %1664 = vmatmul.f32.vlgmr.msra.gmra.mxu2 %v1589_v15 }
 0xd2e   :  { %1896 = vmatpush.msra.mxu1 %v2628_v55  ;;  %1923 = vmatpush.msra.mxu2 %v2639_v58 }
 0xd2f   :  { %v1591_v17 = vsub.f32 %v1589_v15, %v1590_v16  ;;  %1691 = vmatmul.f32.vlgmr.msra.gmra.mxu3 %v1590_v16 }
 0xd30   :  { %1898 = vmatpush.msra.mxu1 %v2659_v3  ;;  %1954 = vmatpush.msra.mxu3 %v2626_v54 }
 0xd31   :  { %v1592_v18 = vand.u32 4294901760, %v1591_v17  ;;  %1927 = vmatpush.msra.mxu2 %v2642_v59 }
 0xd32   :  { %1900 = vmatpush.msra.mxu1 %v2665_v6  ;;  %1956 = vmatpush.msra.mxu3 %v2628_v55 }
 0xd33   :  { %1593 = vmatmul.f32.vlgmr.msra.gmra.mxu0 %v1592_v18  ;;  %1749 = vmatmul.f32.vlgmr.msrb.gmra.mxu1 %v1588_v14 }
 0xd34   :  { %1865 = vmatpush.msra.mxu0 %v2632_v56  ;;  %1958 = vmatpush.msra.mxu3 %v2659_v3 }
 0xd35   :  { %1931 = vmatpush.msra.mxu2 %v2669_v7  ;;  %2040 = vmatpush.msrb.mxu1 %v2651_v62 }
 0xd36   :  { %1868 = vmatpush.msra.mxu0 %v2636_v57  ;;  %1960 = vmatpush.msra.mxu3 %v2665_v6 }
 0xd37   :  { %1935 = vmatpush.msra.mxu2 %v2682_v10  ;;  %2046 = vmatpush.msrb.mxu1 %v2653_v63 }
 0xd38   :  { %1871 = vmatpush.msra.mxu0 %v2662_v5 }
 0xd39   :  { %2052 = vmatpush.msrb.mxu1 %v2686_v11 }
 0xd3a   :  { %1874 = vmatpush.msra.mxu0 %v2672_v8 }
 0xd3b   :  { %1724 = vmatmul.f32.vlgmr.msrb.gmra.mxu0 %v1588_v14  ;;  %2058 = vmatpush.msrb.mxu1 %v2694_v13 }
 0xd3c   :  { %2007 = vmatpush.msrb.mxu0 %v2626_v54 }
 0xd3e   :  { %2009 = vmatpush.msrb.mxu0 %v2628_v55 }
 0xd40   :  { %2011 = vmatpush.msrb.mxu0 %v2659_v3 }
 0xd42   :  { %2013 = vmatpush.msrb.mxu0 %v2665_v6 }
 0xda8   :  { %v1635_v62 = vpop.f32.mrf.mxu1 }
 0xdb0   :  { %v1594_v19 = vpop.f32.mrf.mxu0  ;;  %v1665_v20 = vpop.f32.mrf.mxu2 }
 0xdb1   :  { %v1636_v63 = vadd.f32 %v1635_v62, %v1594_v19  ;;  %v1750_v24 = vpop.f32.mrf.mxu1 }
 0xdb2   :  { %v1692_v35 = vpop.f32.mrf.mxu3 }
 0xdb3   :  { %v1666_v21 = vadd.f32 %v1665_v20, %v1636_v63 }
 0xdb5   :  { %v1693_v11 = vadd.f32 %v1692_v35, %v1666_v21 }
 0xdb8   :  { %v1725_v22 = vpop.f32.mrf.mxu0 }
 0xdb9   :  { %v1726_v23 = vadd.f32 %v1725_v22, %v1693_v11 }
 0xdbb   :  { %v1751_v25 = vadd.f32 %v1750_v24, %v1726_v23 }
 0xdbd   :  { %v1753_v13 = vadd.f32 %v1751_v25, %v2612_v38 }
 0xdbf   :  { %2454 = vtanh.f32 %v1753_v13  ;;  %v1754_v28 = vmul.f32 0.5, %v1753_v13 }
 0xdc1   :  { %2456 = vtanh.f32 %v1754_v28 }
 0xdc5   :  { %v2455_v27 = vpop.eup %2454 }
 0xdc6   :  { %1761 = vrot.lane.b32.xlu1 %v2455_v27, %s2528_s0 }
 0xdc7   :  { %v2457_v29 = vpop.eup %2456 }
 0xdc8   :  { %v1756_v30 = vmul.f32 0.5, %v2457_v29 }
 0xdca   :  { %v1757_v31 = vadd.f32 0.5, %v1756_v30 }
 0xdcc   :  { %v1759_v34 = vmul.f32 %v1757_v31, %v2838_v1 }
 0xe38   :  { %v1762_v32 = vpop.permute.xlu1 %1761 }
 0xe39   :  { %v1764_v33 = vmul.f32 %v1762_v32, %v1757_v31 }
 0xe3b   :  { %1766 = vrot.lane.b32.xlu2 %v1764_v33, %s2529_s24 }
 0xe95   :  { %v1767_v36 = vpop.permute.xlu2 %1766 }
 0xe96   :  { %v1769_v41 = vadd.f32 %v1767_v36, %v1759_v34 }
 0xe98   :  { %2458 = vtanh.f32 %v1769_v41 }
 0xe9e   :  { %v2459_v42 = vpop.eup %2458 }
 0xe9f   :  { %1772 = vrot.lane.b32.xlu0 %v2459_v42, %s2528_s0 }
 0xf11   :  { %v1773_v38 = vpop.permute.xlu0 %1772 }
 0xf12   :  { %v1775_v43 = vmul.f32 %v1773_v38, %v1757_v31 }
 0xf14   :  { %1777 = vrot.lane.b32.xlu1 %v1775_v43, %s2529_s24  ;;  %v40_v43 = vld [vmem:[#allocation2 + $0x60] sm:$0xff] }
 0xf86   :  { %v1778_v44 = vpop.permute.xlu1 %1777 }
 0xf87   :  { %v1779_v45 = vsel %vm713_vm11, %v1778_v44, 0 }
 0xf88   :  { %v1801_v46 = vand.u32 4294901760, %v1779_v45 }
 0xf8a   :  { %v1802_v47 = vsub.f32 %v1779_v45, %v1801_v46  ;;  %1847 = vmatmul.f32.vlgmr.msrb.gmra.mxu3 %v1801_v46  ;;  %v2222_v45 = vand.u32 4294901760, %v40_v43 }
 0xf8b   :  { %2107 = vmatpush.msrb.mxu3 %v2626_v54 }
 0xf8c   :  { %v1803_v48 = vand.u32 4294901760, %v1802_v47  ;;  %1877 = vmatmul.f32.vlgmr.msra.gmra.mxu0 %v1802_v47 }
 0xf8d   :  { %2109 = vmatpush.msrb.mxu3 %v2628_v55  ;;  %2136 = vmatpush.msra.mxu0 %v2639_v58 }
 0xf8e   :  { %v1804_v49 = vsub.f32 %v1802_v47, %v1803_v48  ;;  %1904 = vmatmul.f32.vlgmr.msra.gmra.mxu1 %v1803_v48  ;;  %v2256_v47 = vsub.f32 %v40_v43, %v2222_v45 }
 0xf8f   :  { %2111 = vmatpush.msrb.mxu3 %v2659_v3  ;;  %2167 = vmatpush.msra.mxu1 %v2626_v54 }
 0xf90   :  { %v1805_v26 = vand.u32 4294901760, %v1804_v49  ;;  %2140 = vmatpush.msra.mxu0 %v2642_v59  ;;  %v2257_v49 = vand.u32 4294901760, %v2256_v47 }
 0xf91   :  { %2113 = vmatpush.msrb.mxu3 %v2665_v6  ;;  %2169 = vmatpush.msra.mxu1 %v2628_v55 }
 0xf92   :  { %1806 = vmatmul.f32.vlgmr.msrb.gmra.mxu2 %v1805_v26  ;;  %1962 = vmatmul.f32.vlgmr.msra.gmra.mxu3 %v1801_v46 }
 0xf93   :  { %2078 = vmatpush.msrb.mxu2 %v2632_v56  ;;  %2171 = vmatpush.msra.mxu1 %v2659_v3 }
 0xf94   :  { %2144 = vmatpush.msra.mxu0 %v2669_v7 }
 0xf95   :  { %2081 = vmatpush.msrb.mxu2 %v2636_v57  ;;  %2173 = vmatpush.msra.mxu1 %v2665_v6 }
 0xf96   :  { %2148 = vmatpush.msra.mxu0 %v2682_v10 }
 0xf97   :  { %2084 = vmatpush.msrb.mxu2 %v2662_v5 }
 0xf99   :  { %2087 = vmatpush.msrb.mxu2 %v2672_v8 }
 0xf9a   :  { %1937 = vmatmul.f32.vlgmr.msra.gmra.mxu2 %v1801_v46 }
0x1009   :  { %v1878_v59 = vpop.f32.mrf.mxu0 }
0x100b   :  { %v1905_v51 = vpop.f32.mrf.mxu1 }
0x100d   :  { %v1848_v54 = vpop.f32.mrf.mxu3 }
0x1015   :  { %v1807_v55 = vpop.f32.mrf.mxu2  ;;  %v1963_v53 = vpop.f32.mrf.mxu3 }
0x1016   :  { %v1849_v58 = vadd.f32 %v1848_v54, %v1807_v55  ;;  %v2258_v54 = vsub.f32 %v2256_v47, %v2257_v49 }
0x1018   :  { %v1879_v56 = vadd.f32 %v1878_v59, %v1849_v58  ;;  %v2259_v58 = vand.u32 4294901760, %v2258_v54 }
0x101a   :  { %v1906_v3 = vadd.f32 %v1905_v51, %v1879_v56  ;;  %v39_v51 = vld [vmem:[#allocation2 + $0x58] sm:$0xff] }
0x101d   :  { %v1938_v52 = vpop.f32.mrf.mxu2 }
0x101e   :  { %v1939_v7 = vadd.f32 %v1938_v52, %v1906_v3  ;;  %v2224_v3 = vand.u32 4294901760, %v39_v51  ;;  %v38_v52 = vld [vmem:[#allocation2 + $0x50] sm:$0xff] }
0x1020   :  { %v1964_v57 = vadd.f32 %v1963_v53, %v1939_v7  ;;  %v2262_v7 = vsub.f32 %v39_v51, %v2224_v3  ;;  %v2226_v53 = vand.u32 4294901760, %v38_v52 }
0x1022   :  { %v1966_v6 = vadd.f32 %v1964_v57, %v2615_v39  ;;  %v2263_v57 = vand.u32 4294901760, %v2262_v7 }
0x1024   :  { %2460 = vtanh.f32 %v1966_v6  ;;  %v1967_v5 = vmul.f32 0.5, %v1966_v6  ;;  %v2268_v6 = vsub.f32 %v38_v52, %v2226_v53 }
0x1026   :  { %2462 = vtanh.f32 %v1967_v5  ;;  %v2269_v5 = vand.u32 4294901760, %v2268_v6 }
0x102a   :  { %v2461_v10 = vpop.eup %2460 }
0x102b   :  { %1974 = vrot.lane.b32.xlu2 %v2461_v10, %s2528_s0  ;;  %v2264_v10 = vsub.f32 %v2262_v7, %v2263_v57 }
0x102c   :  { %v2463_v8 = vpop.eup %2462 }
0x102d   :  { %v1969_v60 = vmul.f32 0.5, %v2463_v8  ;;  %v2265_v8 = vand.u32 4294901760, %v2264_v10 }
0x102f   :  { %v1970_v61 = vadd.f32 0.5, %v1969_v60  ;;  %v2270_v60 = vsub.f32 %v2268_v6, %v2269_v5 }
0x1031   :  { %v1972_v1 = vmul.f32 %v1970_v61, %v1769_v41 }
0x1085   :  { %v1975_v0 = vpop.permute.xlu2 %1974 }
0x1086   :  { %v1977_v50 = vmul.f32 %v1975_v0, %v1970_v61 }
0x1088   :  { %1979 = vrot.lane.b32.xlu0 %v1977_v50, %s2529_s24 }
0x10fa   :  { %v1980_v37 = vpop.permute.xlu0 %1979 }
0x10fb   :  { %v1982_v2 = vadd.f32 %v1980_v37, %v1972_v1 }
0x10fd   :  { %2464 = vtanh.f32 %v1982_v2 }
0x1103   :  { %v2465_v4 = vpop.eup %2464 }
0x1104   :  { %1985 = vrot.lane.b32.xlu1 %v2465_v4, %s2528_s0 }
0x1176   :  { %v1986_v39 = vpop.permute.xlu1 %1985 }
0x1177   :  { %v1988_v9 = vmul.f32 %v1986_v39, %v1970_v61  ;;  %v2271_v61 = vand.u32 4294901760, %v2270_v60 }
0x1179   :  { %1990 = vrot.lane.b32.xlu2 %v1988_v9, %s2529_s24  ;;  %v2423_v9 = vld [vmem:[#allocation2 + $0x70] ss:$0 sm:$0xff] }
0x11d3   :  { %v1991_v12 = vpop.permute.xlu2 %1990 }
0x11d4   :  { %v1992_v14 = vsel %vm713_vm11, %v1991_v12, 0 }
0x11d5   :  { %v2014_v15 = vand.u32 4294901760, %v1992_v14 }
0x11d7   :  { %v2015_v16 = vsub.f32 %v1992_v14, %v2014_v15  ;;  %2060 = vmatmul.f32.vlgmr.msrb.gmra.mxu1 %v2014_v15 }
0x11d9   :  { %v2016_v17 = vand.u32 4294901760, %v2015_v16  ;;  %2090 = vmatmul.f32.vlgmr.msrb.gmra.mxu2 %v2015_v16 }
0x11db   :  { %v2017_v18 = vsub.f32 %v2015_v16, %v2016_v17  ;;  %2117 = vmatmul.f32.vlgmr.msrb.gmra.mxu3 %v2016_v17 }
0x11dd   :  { %v2018_v62 = vand.u32 4294901760, %v2017_v18 }
0x11df   :  { %2019 = vmatmul.f32.vlgmr.msrb.gmra.mxu0 %v2018_v62  ;;  %2175 = vmatmul.f32.vlgmr.msra.gmra.mxu1 %v2014_v15 }
0x11e7   :  { %2150 = vmatmul.f32.vlgmr.msra.gmra.mxu0 %v2014_v15 }
0x1254   :  { %v2061_v19 = vpop.f32.mrf.mxu1 }
0x125c   :  { %v2020_v63 = vpop.f32.mrf.mxu0  ;;  %v2091_v21 = vpop.f32.mrf.mxu2 }
0x125d   :  { %v2062_v20 = vadd.f32 %v2061_v19, %v2020_v63  ;;  %v2176_v25 = vpop.f32.mrf.mxu1 }
0x125e   :  { %v2118_v11 = vpop.f32.mrf.mxu3 }
0x125f   :  { %v2092_v35 = vadd.f32 %v2091_v21, %v2062_v20 }
0x1261   :  { %v2119_v22 = vadd.f32 %v2118_v11, %v2092_v35 }
0x1264   :  { %v2151_v23 = vpop.f32.mrf.mxu0 }
0x1265   :  { %v2152_v24 = vadd.f32 %v2151_v23, %v2119_v22 }
0x1267   :  { %v2177_v13 = vadd.f32 %v2176_v25, %v2152_v24 }
0x1269   :  { %v2179_v27 = vadd.f32 %v2177_v13, %v2618_v40  ;;  %v41_v40 = vld [vmem:[#allocation2 + $0x68] sm:$0xff] }
0x126a   :  { %v2220_v44 = vand.u32 4294901760, %v41_v40 }
0x126b   :  { %2466 = vtanh.f32 %v2179_v27  ;;  %v2180_v29 = vmul.f32 0.5, %v2179_v27 }
0x126c   :  { %v2250_v46 = vsub.f32 %v41_v40, %v2220_v44  ;;  %2321 = vmatpush.msrb.mxu1 %v2220_v44  ;;  %2221 = vmatpush.msra.mxu2 %v2220_v44 }
0x126d   :  { %2468 = vtanh.f32 %v2180_v29 }
0x126e   :  { %v2251_v48 = vand.u32 4294901760, %v2250_v46  ;;  %2292 = vmatpush.msrb.mxu0 %v2250_v46  ;;  %2323 = vmatpush.msrb.mxu1 %v2222_v45 }
0x126f   :  { %2223 = vmatpush.msra.mxu2 %v2222_v45 }
0x1270   :  { %v2252_v26 = vsub.f32 %v2250_v46, %v2251_v48  ;;  %2295 = vmatpush.msrb.mxu0 %v2256_v47  ;;  %2325 = vmatpush.msrb.mxu1 %v2224_v3 }
0x1271   :  { %v2467_v28 = vpop.eup %2466  ;;  %2225 = vmatpush.msra.mxu2 %v2224_v3 }
0x1272   :  { %2187 = vrot.lane.b32.xlu0 %v2467_v28, %s2528_s0  ;;  %v2253_v55 = vand.u32 4294901760, %v2252_v26  ;;  %2298 = vmatpush.msrb.mxu0 %v2262_v7 }
0x1273   :  { %v2469_v30 = vpop.eup %2468  ;;  %2327 = vmatpush.msrb.mxu1 %v2226_v53  ;;  %2227 = vmatpush.msra.mxu2 %v2226_v53 }
0x1274   :  { %v2182_v31 = vmul.f32 0.5, %v2469_v30  ;;  %2254 = vmatpush.msra.mxu3 %v2253_v55  ;;  %2301 = vmatpush.msrb.mxu0 %v2268_v6 }
0x1275   :  { %2350 = vmatpush.msrb.mxu2 %v2251_v48 }
0x1276   :  { %v2183_v32 = vadd.f32 0.5, %v2182_v31  ;;  %2260 = vmatpush.msra.mxu3 %v2259_v58 }
0x1277   :  { %2354 = vmatpush.msrb.mxu2 %v2257_v49 }
0x1278   :  { %v2185_v36 = vmul.f32 %v2183_v32, %v1982_v2  ;;  %2266 = vmatpush.msra.mxu3 %v2265_v8 }
0x1279   :  { %2358 = vmatpush.msrb.mxu2 %v2263_v57 }
0x127a   :  { %2272 = vmatpush.msra.mxu3 %v2271_v61 }
0x127b   :  { %2362 = vmatpush.msrb.mxu2 %v2269_v5 }
0x127c   :  { %2381 = vmatpush.msrb.mxu3 %v2220_v44 }
0x127e   :  { %2383 = vmatpush.msrb.mxu3 %v2222_v45 }
0x1280   :  { %2385 = vmatpush.msrb.mxu3 %v2224_v3 }
0x1282   :  { %2387 = vmatpush.msrb.mxu3 %v2226_v53 }
0x12e4   :  { %v2188_v33 = vpop.permute.xlu0 %2187 }
0x12e5   :  { %v2190_v34 = vmul.f32 %v2188_v33, %v2183_v32 }
0x12e7   :  { %2192 = vrot.lane.b32.xlu1 %v2190_v34, %s2529_s24 }
0x1359   :  { %v2193_v41 = vpop.permute.xlu1 %2192 }
0x135a   :  { %v2195_v42 = vadd.f32 %v2193_v41, %v2185_v36 }
0x135c   :  { %2470 = vtanh.f32 %v2195_v42 }
0x1362   :  { %v2471_v38 = vpop.eup %2470 }
0x1363   :  { %2198 = vrot.lane.b32.xlu2 %v2471_v38, %s2528_s0 }
0x13bd   :  { %v2199_v59 = vpop.permute.xlu2 %2198 }
0x13be   :  { %v2201_v56 = vmul.f32 %v2199_v59, %v2183_v32 }
0x13c0   :  { %2204 = vrot.lane.b32.xlu0 %v2201_v56, %s2529_s24 }
0x1432   :  { %v2205_v0 = vpop.permute.xlu0 %2204 }
0x1433   :  { %v2206_v50 = vsel %vm713_vm11, %v2205_v0, 0 }
0x1434   :  { %v2228_v1 = vand.u32 4294901760, %v2206_v50 }
0x1436   :  { %v2229_v37 = vsub.f32 %v2206_v50, %v2228_v1  ;;  %2274 = vmatmul.f32.vlgmr.msra.gmra.mxu3 %v2228_v1 }
0x1438   :  { %v2230_v2 = vand.u32 4294901760, %v2229_v37  ;;  %2304 = vmatmul.f32.vlgmr.msrb.gmra.mxu0 %v2229_v37 }
0x143a   :  { %v2231_v4 = vsub.f32 %v2229_v37, %v2230_v2  ;;  %2331 = vmatmul.f32.vlgmr.msrb.gmra.mxu1 %v2230_v2 }
0x143c   :  { %v2232_v39 = vand.u32 4294901760, %v2231_v4 }
0x143e   :  { %2233 = vmatmul.f32.vlgmr.msra.gmra.mxu2 %v2232_v39  ;;  %2389 = vmatmul.f32.vlgmr.msrb.gmra.mxu3 %v2228_v1 }
0x1446   :  { %2364 = vmatmul.f32.vlgmr.msrb.gmra.mxu2 %v2228_v1 }
0x14b5   :  { %v2305_v17 = vpop.f32.mrf.mxu0 }
0x14b7   :  { %v2332_v62 = vpop.f32.mrf.mxu1 }
0x14b9   :  { %v2275_v12 = vpop.f32.mrf.mxu3 }
0x14c1   :  { %v2234_v14 = vpop.f32.mrf.mxu2  ;;  %v2390_v21 = vpop.f32.mrf.mxu3 }
0x14c2   :  { %v2235_v15 = vadd.f32 %v2423_v9, %v2234_v14 }
0x14c4   :  { %v2276_v16 = vadd.f32 %v2275_v12, %v2235_v15 }
0x14c6   :  { %v2306_v18 = vadd.f32 %v2305_v17, %v2276_v16 }
0x14c8   :  { %v2333_v19 = vadd.f32 %v2332_v62, %v2306_v18 }
0x14c9   :  { %v2365_v63 = vpop.f32.mrf.mxu2 }
0x14ca   :  { %v2366_v20 = vadd.f32 %v2365_v63, %v2333_v19 }
0x14cc   :  { %v2391_v35 = vadd.f32 %v2390_v21, %v2366_v20 }
0x14ce   :  { %2394 = vst.msk [vmem:[#allocation5] sm:$0x3] %vm2393_vm12, %v2391_v35 }
0x14cf   :  { %2405 = dma.vmem_to_hbm [thread:$0]  %s2401_s26, 32, %s2403_s29, [#allocation4]  }
0x14d0   :  { %2522 = dma.done.wait [#allocation4], 32  }
0x14d1   :  { %2523 = vsyncadd [#allocation4], 4294967264 }
0x14d2   :  { %2410 = vsyncpa [#allocation3], 1 }
0x14d3   :  { %2411 = vsyncpa [#allocation4], 1 }

</bundles_post_ra>
